<compile_context>
chip_gen: v6e
topology: v6e:2x2x1
jax: 0.10.0
libtpu: 0.0.40
codegen_flags: <defaults>
</compile_context>

<pallas_src>
import functools

import jax
import jax.numpy as jnp
from jax.experimental import pallas as pl
from jax.experimental.pallas import tpu as pltpu


_SQRT_HALF = 0.7071067811865476


def _erf_approx(x):
    # Abramowitz & Stegun 7.1.26 (max abs err ~1.5e-7): stand-in for the exact
    # erf of torch.nn.GELU(approximate='none'); uses only VPU/EUP ops.
    p = 0.3275911
    a1, a2, a3, a4, a5 = 0.254829592, -0.284496736, 1.421413741, -1.453152027, 1.061405429
    s = jnp.where(x >= 0.0, 1.0, -1.0)
    ax = jnp.abs(x)
    t = 1.0 / (1.0 + p * ax)
    poly = ((((a5 * t + a4) * t + a3) * t + a2) * t + a1) * t
    return s * (1.0 - poly * jnp.exp(-ax * ax))


def _gelu(x):
    # exact-form GELU: 0.5 * x * (1 + erf(x / sqrt(2))), computed in f32
    return 0.5 * x * (1.0 + _erf_approx(x * _SQRT_HALF))


# ---------------------------------------------------------------------------
# The single fused Pallas kernel: out = act(lhs @ rhs + bias)
# ---------------------------------------------------------------------------
def _gemm_bias_act_kernel(lhs_ref, rhs_ref, bias_ref, o_ref, *, apply_gelu):
    acc = jnp.dot(lhs_ref[...], rhs_ref[...], preferred_element_type=jnp.float32)
    acc = acc + bias_ref[...].astype(jnp.float32)   # bias + activation stay in f32
    if apply_gelu:
        acc = _gelu(acc)
    o_ref[...] = acc.astype(o_ref.dtype)


def fused_matmul_bias_act(lhs, rhs, bias2d, *, apply_gelu):
    """One pallas_call: act(lhs @ rhs + bias2d).

    Full-array blocks, single grid step, no padding/slicing.  For conv layers
    the caller passes lhs = W^T [N, K], rhs = X^T [K, M] so the *wide* spatial
    dim M = B*H*W sits on the lane axis (lane-dense output); for the fc layer
    the natural [B, z_dim] @ [z_dim, 2*nf*16] orientation is already lane-dense.
    """
    m, k = lhs.shape
    k2, n = rhs.shape
    assert k == k2, (lhs.shape, rhs.shape)
    assert bias2d.ndim == 2

    kernel = functools.partial(_gemm_bias_act_kernel, apply_gelu=apply_gelu)
    return pl.pallas_call(
        kernel,
        out_shape=jax.ShapeDtypeStruct((m, n), jnp.float32),
        grid=(1,),
        in_specs=[
            pl.BlockSpec((m, k), lambda i: (0, 0)),
            pl.BlockSpec((k, n), lambda i: (0, 0)),
            pl.BlockSpec(bias2d.shape, lambda i: (0, 0)),
        ],
        out_specs=pl.BlockSpec((m, n), lambda i: (0, 0)),
        compiler_params=pltpu.CompilerParams(dimension_semantics=("arbitrary",)),
    )(lhs, rhs, bias2d)


# ---------------------------------------------------------------------------
# Layer wrappers (XLA glue builds small bf16 patch matrices; all math in Pallas)
# Inter-layer activation layout is channel-first [C, B, H, W] so patch matrices
# [K, B*H*W] come out of plain slices + concat with no transposes.
# ---------------------------------------------------------------------------
def conv3x3_same(x_cbhw, w_oihw, b, *, apply_gelu, use_bf16=True):
    """PyTorch Conv2d(k=3, stride=1, padding=1) as one fused lane-dense GEMM."""
    Cin, B, H, W = x_cbhw.shape
    Cout, Cin2, kh, kw = w_oihw.shape
    assert (Cin, kh, kw) == (Cin2, 3, 3)
    xp = jnp.pad(x_cbhw, ((0, 0), (0, 0), (1, 1), (1, 1)))
    # im2col in glue, already transposed: K = (ky, kx, ci), M = (b, h, w)
    taps = [xp[:, :, ky:ky + H, kx:kx + W] for ky in range(3) for kx in range(3)]
    patches = jnp.concatenate(taps, axis=0).reshape(9 * Cin, B * H * W)
    w_t = jnp.transpose(w_oihw, (0, 2, 3, 1)).reshape(Cout, 9 * Cin)  # [Cout, 9*Cin]
    if use_bf16:
        w_t = w_t.astype(jnp.bfloat16)
        patches = patches.astype(jnp.bfloat16)
    y = fused_matmul_bias_act(w_t, patches, b.reshape(Cout, 1),
                              apply_gelu=apply_gelu)                  # [Cout, B*H*W]
    return y.reshape(Cout, B, H, W)


def conv_transpose3x3_s2(x_cbhw, w_iohw, b, *, output_padding, apply_gelu,
                         use_bf16=True):
    """PyTorch ConvTranspose2d(k=3, stride=2, padding=1, output_padding=op)
    via sub-pixel decomposition: one dense GEMM on the un-dilated input
    (4 output phases stacked on the N axis), then depth-to-space in glue."""
    Cin, B, H, W = x_cbhw.shape
    Cin2, Cout, kh, kw = w_iohw.shape
    assert (Cin, kh, kw) == (Cin2, 3, 3)
    # One zero row/col at bottom/right feeds the (py, px) = 1 taps.
    xp = jnp.pad(x_cbhw, ((0, 0), (0, 0), (0, 1), (0, 1)))
    taps = [xp[:, :, py:py + H, px:px + W] for py in range(2) for px in range(2)]
    patches = jnp.concatenate(taps, axis=0).reshape(4 * Cin, B * H * W)

    # Phase weights: y[2m+pr, 2n+pc] uses kernel tap (ky, kx) = (pr-2*py+1, pc-2*px+1)
    # applied to x[m+py, n+px] (zero if the tap index falls outside [0, 2]).
    zero_blk = jnp.zeros((Cout, Cin), w_iohw.dtype)
    rows = []
    for pr in range(2):
        for pc in range(2):
            blocks = []
            for py in range(2):
                for px in range(2):
                    ky = pr - 2 * py + 1
                    kx = pc - 2 * px + 1
                    if 0 <= ky <= 2 and 0 <= kx <= 2:
                        blocks.append(jnp.transpose(w_iohw[:, :, ky, kx]))  # [Cout, Cin]
                    else:
                        blocks.append(zero_blk)
            rows.append(jnp.concatenate(blocks, axis=1))                    # [Cout, 4*Cin]
    w_sub = jnp.concatenate(rows, axis=0)                                    # [4*Cout, 4*Cin]
    bias = jnp.tile(b, 4).reshape(4 * Cout, 1)

    if use_bf16:
        w_sub = w_sub.astype(jnp.bfloat16)
        patches = patches.astype(jnp.bfloat16)
    yp = fused_matmul_bias_act(w_sub, patches, bias,
                               apply_gelu=apply_gelu)                        # [4*Cout, B*H*W]

    # depth-to-space (pixel shuffle) in glue: (pr, pc, co, b, m, n) -> (co, b, 2m+pr, 2n+pc)
    y = yp.reshape(2, 2, Cout, B, H, W)
    y = jnp.transpose(y, (2, 3, 4, 0, 5, 1)).reshape(Cout, B, 2 * H, 2 * W)
    Ho = 2 * H - 1 + output_padding
    Wo = 2 * W - 1 + output_padding
    return y[:, :, :Ho, :Wo]


# ---------------------------------------------------------------------------
# Parameters + full forward pass
# ---------------------------------------------------------------------------
def init_params(key, num_input_channels, num_filters, z_dim, dtype=jnp.float32):
    """Deterministic synthetic parameters with the module's shapes."""
    nf = num_filters

    def draw(k, fan_in, shape):
        return jax.random.normal(k, shape, dtype) / jnp.sqrt(jnp.asarray(fan_in, dtype))

    ks = jax.random.split(key, 12)
    p = {}
    p["fc_w"] = draw(ks[0], z_dim, (z_dim, 2 * nf * 4 * 4))   # Linear, stored [in, out]
    p["fc_b"] = draw(ks[1], z_dim, (2 * nf * 4 * 4,))
    # ConvTranspose2d weights: [Cin, Cout, 3, 3]; Conv2d weights: [Cout, Cin, 3, 3]
    p["c1_w"] = draw(ks[2], 2 * nf * 9, (2 * nf, 2 * nf, 3, 3))
    p["c1_b"] = draw(ks[3], 2 * nf * 9, (2 * nf,))
    p["c2_w"] = draw(ks[4], 2 * nf * 9, (2 * nf, 2 * nf, 3, 3))
    p["c2_b"] = draw(ks[5], 2 * nf * 9, (2 * nf,))
    p["c3_w"] = draw(ks[6], 2 * nf * 9, (2 * nf, nf, 3, 3))
    p["c3_b"] = draw(ks[7], 2 * nf * 9, (nf,))
    p["c4_w"] = draw(ks[8], nf * 9, (nf, nf, 3, 3))
    p["c4_b"] = draw(ks[9], nf * 9, (nf,))
    p["c5_w"] = draw(ks[10], nf * 9, (nf, num_input_channels, 3, 3))
    p["c5_b"] = draw(ks[11], nf * 9, (num_input_channels,))
    return p


def cnn_decoder_forward(z, params, *, num_input_channels, num_filters, use_bf16=True):
    nf = num_filters
    B = z.shape[0]
    assert params["fc_w"].shape[1] == 2 * nf * 16
    assert params["c5_w"].shape[1] == num_input_channels

    # fc_in + GELU: natural orientation [B, 2*nf*16] is already lane-dense (N=256);
    # no padding of B, no output slicing.
    lhs = z.astype(jnp.bfloat16) if use_bf16 else z
    rhs = params["fc_w"].astype(jnp.bfloat16) if use_bf16 else params["fc_w"]
    h = fused_matmul_bias_act(lhs, rhs, params["fc_b"].reshape(1, -1), apply_gelu=True)

    x = h.reshape(B, 2 * nf, 4, 4)          # matches torch .view(-1, 2*nf, 4, 4)
    x = jnp.transpose(x, (1, 0, 2, 3))      # -> channel-first [C, B, 4, 4]

    x = conv_transpose3x3_s2(x, params["c1_w"], params["c1_b"], output_padding=0,
                             apply_gelu=True, use_bf16=use_bf16)   # [2nf, B, 7, 7]
    x = conv3x3_same(x, params["c2_w"], params["c2_b"],
                     apply_gelu=True, use_bf16=use_bf16)           # [2nf, B, 7, 7]
    x = conv_transpose3x3_s2(x, params["c3_w"], params["c3_b"], output_padding=1,
                             apply_gelu=True, use_bf16=use_bf16)   # [nf, B, 14, 14]
    x = conv3x3_same(x, params["c4_w"], params["c4_b"],
                     apply_gelu=True, use_bf16=use_bf16)           # [nf, B, 14, 14]
    x = conv_transpose3x3_s2(x, params["c5_w"], params["c5_b"], output_padding=1,
                             apply_gelu=False, use_bf16=use_bf16)  # [C, B, 28, 28] logits
    return jnp.transpose(x, (1, 0, 2, 3))   # -> NCHW [B, C, 28, 28]


if __name__ == "__main__":
    # Small but architecture-consistent config: spatial path is 4 -> 7 -> 14 -> 28.
    num_input_channels, num_filters, z_dim = 4, 8, 16
    batch = 2

    key = jax.random.PRNGKey(0)
    pkey, zkey = jax.random.split(key)
    params = init_params(pkey, num_input_channels, num_filters, z_dim)
    z = jax.random.normal(zkey, (batch, z_dim), jnp.float32)

    fwd = jax.jit(functools.partial(cnn_decoder_forward,
                                    num_input_channels=num_input_channels,
                                    num_filters=num_filters))
    out = jax.block_until_ready(fwd(z, params))

    assert out.shape == (batch, num_input_channels, 28, 28), out.shape
    assert bool(jnp.all(jnp.isfinite(out)))
    print("KERNEL_OK")
</pallas_src>

<mosaic_0001>
module attributes {stable_mosaic.version = 11 : i64} {
  func.func @_gemm_bias_act_kernel(%arg0: i32, %arg1: memref<2x16xbf16, #tpu.memory_space<vmem>>, %arg2: memref<16x256xbf16, #tpu.memory_space<vmem>>, %arg3: memref<1x256xf32, #tpu.memory_space<vmem>>, %arg4: memref<2x256xf32, #tpu.memory_space<vmem>>) attributes {dimension_semantics = [#tpu.dimension_semantics<arbitrary>], iteration_bounds = array<i64: 1>, scalar_prefetch = 0 : i64, scratch_operands = 0 : i64, tpu.core_type = #tpu.core_type<tc>, window_params = [{pipeline_mode = #tpu.pipeline_mode<synchronous>, transform_indices = @transform_0, window_bounds = array<i64: 2, 16>}, {pipeline_mode = #tpu.pipeline_mode<synchronous>, transform_indices = @transform_1, window_bounds = array<i64: 16, 256>}, {pipeline_mode = #tpu.pipeline_mode<synchronous>, transform_indices = @transform_2, window_bounds = array<i64: 1, 256>}, {pipeline_mode = #tpu.pipeline_mode<synchronous>, transform_indices = @transform_3, window_bounds = array<i64: 2, 256>}]} {
    %c0 = arith.constant 0 : index
    %c0_0 = arith.constant 0 : index
    %0 = vector.load %arg1[%c0, %c0_0] : memref<2x16xbf16, #tpu.memory_space<vmem>>, vector<2x16xbf16>
    %c0_1 = arith.constant 0 : index
    %c0_2 = arith.constant 0 : index
    %1 = vector.load %arg2[%c0_1, %c0_2] : memref<16x256xbf16, #tpu.memory_space<vmem>>, vector<16x256xbf16>
    %cst = arith.constant dense<0.000000e+00> : vector<2x256xf32>
    %2 = tpu.matmul %0, %1, %cst {dimension_numbers = #tpu.dot_dimension_numbers<[1], [0], [0], [1], [0, 0, 1, 1], [], []>} : vector<2x16xbf16>, vector<16x256xbf16>, vector<2x256xf32> -> vector<2x256xf32>
    %c0_3 = arith.constant 0 : index
    %c0_4 = arith.constant 0 : index
    %3 = vector.load %arg3[%c0_3, %c0_4] : memref<1x256xf32, #tpu.memory_space<vmem>>, vector<1x256xf32>
    %4 = vector.broadcast %3 : vector<1x256xf32> to vector<2x256xf32>
    %5 = arith.addf %2, %4 : vector<2x256xf32>
    %cst_5 = arith.constant 5.000000e-01 : f32
    %6 = vector.broadcast %cst_5 : f32 to vector<2x256xf32>
    %7 = arith.mulf %6, %5 : vector<2x256xf32>
    %cst_6 = arith.constant 0.707106769 : f32
    %8 = vector.broadcast %cst_6 : f32 to vector<2x256xf32>
    %9 = arith.mulf %5, %8 : vector<2x256xf32>
    %cst_7 = arith.constant 0.000000e+00 : f32
    %10 = vector.broadcast %cst_7 : f32 to vector<2x256xf32>
    %11 = arith.cmpf oge, %9, %10 : vector<2x256xf32>
    %cst_8 = arith.constant 1.000000e+00 : f32
    %cst_9 = arith.constant -1.000000e+00 : f32
    %12 = vector.broadcast %cst_8 : f32 to vector<2x256xf32>
    %13 = vector.broadcast %cst_9 : f32 to vector<2x256xf32>
    %14 = arith.select %11, %12, %13 : vector<2x256xi1>, vector<2x256xf32>
    %15 = math.absf %9 : vector<2x256xf32>
    %cst_10 = arith.constant 0.327591091 : f32
    %16 = vector.broadcast %cst_10 : f32 to vector<2x256xf32>
    %17 = arith.mulf %16, %15 : vector<2x256xf32>
    %cst_11 = arith.constant 1.000000e+00 : f32
    %18 = vector.broadcast %cst_11 : f32 to vector<2x256xf32>
    %19 = arith.addf %18, %17 : vector<2x256xf32>
    %cst_12 = arith.constant 1.000000e+00 : f32
    %20 = vector.broadcast %cst_12 : f32 to vector<2x256xf32>
    %21 = arith.divf %20, %19 : vector<2x256xf32>
    %cst_13 = arith.constant 1.06140542 : f32
    %22 = vector.broadcast %cst_13 : f32 to vector<2x256xf32>
    %23 = arith.mulf %22, %21 : vector<2x256xf32>
    %cst_14 = arith.constant -1.45315206 : f32
    %24 = vector.broadcast %cst_14 : f32 to vector<2x256xf32>
    %25 = arith.addf %23, %24 : vector<2x256xf32>
    %26 = arith.mulf %25, %21 : vector<2x256xf32>
    %cst_15 = arith.constant 1.42141378 : f32
    %27 = vector.broadcast %cst_15 : f32 to vector<2x256xf32>
    %28 = arith.addf %26, %27 : vector<2x256xf32>
    %29 = arith.mulf %28, %21 : vector<2x256xf32>
    %cst_16 = arith.constant -0.284496725 : f32
    %30 = vector.broadcast %cst_16 : f32 to vector<2x256xf32>
    %31 = arith.addf %29, %30 : vector<2x256xf32>
    %32 = arith.mulf %31, %21 : vector<2x256xf32>
    %cst_17 = arith.constant 0.254829586 : f32
    %33 = vector.broadcast %cst_17 : f32 to vector<2x256xf32>
    %34 = arith.addf %32, %33 : vector<2x256xf32>
    %35 = arith.mulf %34, %21 : vector<2x256xf32>
    %cst_18 = arith.constant 0.000000e+00 : f32
    %36 = vector.broadcast %cst_18 : f32 to vector<2x256xf32>
    %37 = arith.subf %36, %15 : vector<2x256xf32>
    %38 = arith.mulf %37, %15 : vector<2x256xf32>
    %39 = math.exp %38 : vector<2x256xf32>
    %40 = arith.mulf %35, %39 : vector<2x256xf32>
    %cst_19 = arith.constant 1.000000e+00 : f32
    %41 = vector.broadcast %cst_19 : f32 to vector<2x256xf32>
    %42 = arith.subf %41, %40 : vector<2x256xf32>
    %43 = arith.mulf %14, %42 : vector<2x256xf32>
    %cst_20 = arith.constant 1.000000e+00 : f32
    %44 = vector.broadcast %cst_20 : f32 to vector<2x256xf32>
    %45 = arith.addf %44, %43 : vector<2x256xf32>
    %46 = arith.mulf %7, %45 : vector<2x256xf32>
    %c0_21 = arith.constant 0 : index
    %c0_22 = arith.constant 0 : index
    %47 = vector.load %arg4[%c0_21, %c0_22] : memref<2x256xf32, #tpu.memory_space<vmem>>, vector<2x256xf32>
    tpu.vector_store %arg4[%c0_21, %c0_22], %46 {strides = array<i32>} : memref<2x256xf32, #tpu.memory_space<vmem>>, vector<2x256xf32>,
    return
  }
  func.func @transform_0(%arg0: i32) -> (i32, i32) {
    %c0_i32 = arith.constant 0 : i32
    %c0_i32_0 = arith.constant 0 : i32
    %c0_i32_1 = arith.constant 0 : i32
    return %c0_i32, %c0_i32_0 : i32, i32
  }
  func.func @transform_1(%arg0: i32) -> (i32, i32) {
    %c0_i32 = arith.constant 0 : i32
    %c0_i32_0 = arith.constant 0 : i32
    %c0_i32_1 = arith.constant 0 : i32
    return %c0_i32, %c0_i32_0 : i32, i32
  }
  func.func @transform_2(%arg0: i32) -> (i32, i32) {
    %c0_i32 = arith.constant 0 : i32
    %c0_i32_0 = arith.constant 0 : i32
    %c0_i32_1 = arith.constant 0 : i32
    return %c0_i32, %c0_i32_0 : i32, i32
  }
  func.func @transform_3(%arg0: i32) -> (i32, i32) {
    %c0_i32 = arith.constant 0 : i32
    %c0_i32_0 = arith.constant 0 : i32
    %c0_i32_1 = arith.constant 0 : i32
    return %c0_i32, %c0_i32_0 : i32, i32
  }
}

module attributes {stable_mosaic.version = 11 : i64} {
  func.func @_gemm_bias_act_kernel(%arg0: i32, %arg1: memref<64x64xbf16, #tpu.memory_space<vmem>>, %arg2: memref<64x32xbf16, #tpu.memory_space<vmem>>, %arg3: memref<64x1xf32, #tpu.memory_space<vmem>>, %arg4: memref<64x32xf32, #tpu.memory_space<vmem>>) attributes {dimension_semantics = [#tpu.dimension_semantics<arbitrary>], iteration_bounds = array<i64: 1>, scalar_prefetch = 0 : i64, scratch_operands = 0 : i64, tpu.core_type = #tpu.core_type<tc>, window_params = [{pipeline_mode = #tpu.pipeline_mode<synchronous>, transform_indices = @transform_0, window_bounds = array<i64: 64, 64>}, {pipeline_mode = #tpu.pipeline_mode<synchronous>, transform_indices = @transform_1, window_bounds = array<i64: 64, 32>}, {pipeline_mode = #tpu.pipeline_mode<synchronous>, transform_indices = @transform_2, window_bounds = array<i64: 64, 1>}, {pipeline_mode = #tpu.pipeline_mode<synchronous>, transform_indices = @transform_3, window_bounds = array<i64: 64, 32>}]} {
    %c0 = arith.constant 0 : index
    %c0_0 = arith.constant 0 : index
    %0 = vector.load %arg1[%c0, %c0_0] : memref<64x64xbf16, #tpu.memory_space<vmem>>, vector<64x64xbf16>
    %c0_1 = arith.constant 0 : index
    %c0_2 = arith.constant 0 : index
    %1 = vector.load %arg2[%c0_1, %c0_2] : memref<64x32xbf16, #tpu.memory_space<vmem>>, vector<64x32xbf16>
    %cst = arith.constant dense<0.000000e+00> : vector<64x32xf32>
    %2 = tpu.matmul %0, %1, %cst {dimension_numbers = #tpu.dot_dimension_numbers<[1], [0], [0], [1], [0, 0, 1, 1], [], []>} : vector<64x64xbf16>, vector<64x32xbf16>, vector<64x32xf32> -> vector<64x32xf32>
    %c0_3 = arith.constant 0 : index
    %c0_4 = arith.constant 0 : index
    %3 = vector.load %arg3[%c0_3, %c0_4] : memref<64x1xf32, #tpu.memory_space<vmem>>, vector<64x1xf32>
    %4 = vector.broadcast %3 : vector<64x1xf32> to vector<64x32xf32>
    %5 = arith.addf %2, %4 : vector<64x32xf32>
    %cst_5 = arith.constant 5.000000e-01 : f32
    %6 = vector.broadcast %cst_5 : f32 to vector<64x32xf32>
    %7 = arith.mulf %6, %5 : vector<64x32xf32>
    %cst_6 = arith.constant 0.707106769 : f32
    %8 = vector.broadcast %cst_6 : f32 to vector<64x32xf32>
    %9 = arith.mulf %5, %8 : vector<64x32xf32>
    %cst_7 = arith.constant 0.000000e+00 : f32
    %10 = vector.broadcast %cst_7 : f32 to vector<64x32xf32>
    %11 = arith.cmpf oge, %9, %10 : vector<64x32xf32>
    %cst_8 = arith.constant 1.000000e+00 : f32
    %cst_9 = arith.constant -1.000000e+00 : f32
    %12 = vector.broadcast %cst_8 : f32 to vector<64x32xf32>
    %13 = vector.broadcast %cst_9 : f32 to vector<64x32xf32>
    %14 = arith.select %11, %12, %13 : vector<64x32xi1>, vector<64x32xf32>
    %15 = math.absf %9 : vector<64x32xf32>
    %cst_10 = arith.constant 0.327591091 : f32
    %16 = vector.broadcast %cst_10 : f32 to vector<64x32xf32>
    %17 = arith.mulf %16, %15 : vector<64x32xf32>
    %cst_11 = arith.constant 1.000000e+00 : f32
    %18 = vector.broadcast %cst_11 : f32 to vector<64x32xf32>
    %19 = arith.addf %18, %17 : vector<64x32xf32>
    %cst_12 = arith.constant 1.000000e+00 : f32
    %20 = vector.broadcast %cst_12 : f32 to vector<64x32xf32>
    %21 = arith.divf %20, %19 : vector<64x32xf32>
    %cst_13 = arith.constant 1.06140542 : f32
    %22 = vector.broadcast %cst_13 : f32 to vector<64x32xf32>
    %23 = arith.mulf %22, %21 : vector<64x32xf32>
    %cst_14 = arith.constant -1.45315206 : f32
    %24 = vector.broadcast %cst_14 : f32 to vector<64x32xf32>
    %25 = arith.addf %23, %24 : vector<64x32xf32>
    %26 = arith.mulf %25, %21 : vector<64x32xf32>
    %cst_15 = arith.constant 1.42141378 : f32
    %27 = vector.broadcast %cst_15 : f32 to vector<64x32xf32>
    %28 = arith.addf %26, %27 : vector<64x32xf32>
    %29 = arith.mulf %28, %21 : vector<64x32xf32>
    %cst_16 = arith.constant -0.284496725 : f32
    %30 = vector.broadcast %cst_16 : f32 to vector<64x32xf32>
    %31 = arith.addf %29, %30 : vector<64x32xf32>
    %32 = arith.mulf %31, %21 : vector<64x32xf32>
    %cst_17 = arith.constant 0.254829586 : f32
    %33 = vector.broadcast %cst_17 : f32 to vector<64x32xf32>
    %34 = arith.addf %32, %33 : vector<64x32xf32>
    %35 = arith.mulf %34, %21 : vector<64x32xf32>
    %cst_18 = arith.constant 0.000000e+00 : f32
    %36 = vector.broadcast %cst_18 : f32 to vector<64x32xf32>
    %37 = arith.subf %36, %15 : vector<64x32xf32>
    %38 = arith.mulf %37, %15 : vector<64x32xf32>
    %39 = math.exp %38 : vector<64x32xf32>
    %40 = arith.mulf %35, %39 : vector<64x32xf32>
    %cst_19 = arith.constant 1.000000e+00 : f32
    %41 = vector.broadcast %cst_19 : f32 to vector<64x32xf32>
    %42 = arith.subf %41, %40 : vector<64x32xf32>
    %43 = arith.mulf %14, %42 : vector<64x32xf32>
    %cst_20 = arith.constant 1.000000e+00 : f32
    %44 = vector.broadcast %cst_20 : f32 to vector<64x32xf32>
    %45 = arith.addf %44, %43 : vector<64x32xf32>
    %46 = arith.mulf %7, %45 : vector<64x32xf32>
    %c0_21 = arith.constant 0 : index
    %c0_22 = arith.constant 0 : index
    %47 = vector.load %arg4[%c0_21, %c0_22] : memref<64x32xf32, #tpu.memory_space<vmem>>, vector<64x32xf32>
    tpu.vector_store %arg4[%c0_21, %c0_22], %46 {strides = array<i32>} : memref<64x32xf32, #tpu.memory_space<vmem>>, vector<64x32xf32>,
    return
  }
  func.func @transform_0(%arg0: i32) -> (i32, i32) {
    %c0_i32 = arith.constant 0 : i32
    %c0_i32_0 = arith.constant 0 : i32
    %c0_i32_1 = arith.constant 0 : i32
    return %c0_i32, %c0_i32_0 : i32, i32
  }
  func.func @transform_1(%arg0: i32) -> (i32, i32) {
    %c0_i32 = arith.constant 0 : i32
    %c0_i32_0 = arith.constant 0 : i32
    %c0_i32_1 = arith.constant 0 : i32
    return %c0_i32, %c0_i32_0 : i32, i32
  }
  func.func @transform_2(%arg0: i32) -> (i32, i32) {
    %c0_i32 = arith.constant 0 : i32
    %c0_i32_0 = arith.constant 0 : i32
    %c0_i32_1 = arith.constant 0 : i32
    return %c0_i32, %c0_i32_0 : i32, i32
  }
  func.func @transform_3(%arg0: i32) -> (i32, i32) {
    %c0_i32 = arith.constant 0 : i32
    %c0_i32_0 = arith.constant 0 : i32
    %c0_i32_1 = arith.constant 0 : i32
    return %c0_i32, %c0_i32_0 : i32, i32
  }
}

module attributes {stable_mosaic.version = 11 : i64} {
  func.func @_gemm_bias_act_kernel(%arg0: i32, %arg1: memref<16x144xbf16, #tpu.memory_space<vmem>>, %arg2: memref<144x98xbf16, #tpu.memory_space<vmem>>, %arg3: memref<16x1xf32, #tpu.memory_space<vmem>>, %arg4: memref<16x98xf32, #tpu.memory_space<vmem>>) attributes {dimension_semantics = [#tpu.dimension_semantics<arbitrary>], iteration_bounds = array<i64: 1>, scalar_prefetch = 0 : i64, scratch_operands = 0 : i64, tpu.core_type = #tpu.core_type<tc>, window_params = [{pipeline_mode = #tpu.pipeline_mode<synchronous>, transform_indices = @transform_0, window_bounds = array<i64: 16, 144>}, {pipeline_mode = #tpu.pipeline_mode<synchronous>, transform_indices = @transform_1, window_bounds = array<i64: 144, 98>}, {pipeline_mode = #tpu.pipeline_mode<synchronous>, transform_indices = @transform_2, window_bounds = array<i64: 16, 1>}, {pipeline_mode = #tpu.pipeline_mode<synchronous>, transform_indices = @transform_3, window_bounds = array<i64: 16, 98>}]} {
    %c0 = arith.constant 0 : index
    %c0_0 = arith.constant 0 : index
    %0 = vector.load %arg1[%c0, %c0_0] : memref<16x144xbf16, #tpu.memory_space<vmem>>, vector<16x144xbf16>
    %c0_1 = arith.constant 0 : index
    %c0_2 = arith.constant 0 : index
    %1 = vector.load %arg2[%c0_1, %c0_2] : memref<144x98xbf16, #tpu.memory_space<vmem>>, vector<144x98xbf16>
    %cst = arith.constant dense<0.000000e+00> : vector<16x98xf32>
    %2 = tpu.matmul %0, %1, %cst {dimension_numbers = #tpu.dot_dimension_numbers<[1], [0], [0], [1], [0, 0, 1, 1], [], []>} : vector<16x144xbf16>, vector<144x98xbf16>, vector<16x98xf32> -> vector<16x98xf32>
    %c0_3 = arith.constant 0 : index
    %c0_4 = arith.constant 0 : index
    %3 = vector.load %arg3[%c0_3, %c0_4] : memref<16x1xf32, #tpu.memory_space<vmem>>, vector<16x1xf32>
    %4 = vector.broadcast %3 : vector<16x1xf32> to vector<16x98xf32>
    %5 = arith.addf %2, %4 : vector<16x98xf32>
    %cst_5 = arith.constant 5.000000e-01 : f32
    %6 = vector.broadcast %cst_5 : f32 to vector<16x98xf32>
    %7 = arith.mulf %6, %5 : vector<16x98xf32>
    %cst_6 = arith.constant 0.707106769 : f32
    %8 = vector.broadcast %cst_6 : f32 to vector<16x98xf32>
    %9 = arith.mulf %5, %8 : vector<16x98xf32>
    %cst_7 = arith.constant 0.000000e+00 : f32
    %10 = vector.broadcast %cst_7 : f32 to vector<16x98xf32>
    %11 = arith.cmpf oge, %9, %10 : vector<16x98xf32>
    %cst_8 = arith.constant 1.000000e+00 : f32
    %cst_9 = arith.constant -1.000000e+00 : f32
    %12 = vector.broadcast %cst_8 : f32 to vector<16x98xf32>
    %13 = vector.broadcast %cst_9 : f32 to vector<16x98xf32>
    %14 = arith.select %11, %12, %13 : vector<16x98xi1>, vector<16x98xf32>
    %15 = math.absf %9 : vector<16x98xf32>
    %cst_10 = arith.constant 0.327591091 : f32
    %16 = vector.broadcast %cst_10 : f32 to vector<16x98xf32>
    %17 = arith.mulf %16, %15 : vector<16x98xf32>
    %cst_11 = arith.constant 1.000000e+00 : f32
    %18 = vector.broadcast %cst_11 : f32 to vector<16x98xf32>
    %19 = arith.addf %18, %17 : vector<16x98xf32>
    %cst_12 = arith.constant 1.000000e+00 : f32
    %20 = vector.broadcast %cst_12 : f32 to vector<16x98xf32>
    %21 = arith.divf %20, %19 : vector<16x98xf32>
    %cst_13 = arith.constant 1.06140542 : f32
    %22 = vector.broadcast %cst_13 : f32 to vector<16x98xf32>
    %23 = arith.mulf %22, %21 : vector<16x98xf32>
    %cst_14 = arith.constant -1.45315206 : f32
    %24 = vector.broadcast %cst_14 : f32 to vector<16x98xf32>
    %25 = arith.addf %23, %24 : vector<16x98xf32>
    %26 = arith.mulf %25, %21 : vector<16x98xf32>
    %cst_15 = arith.constant 1.42141378 : f32
    %27 = vector.broadcast %cst_15 : f32 to vector<16x98xf32>
    %28 = arith.addf %26, %27 : vector<16x98xf32>
    %29 = arith.mulf %28, %21 : vector<16x98xf32>
    %cst_16 = arith.constant -0.284496725 : f32
    %30 = vector.broadcast %cst_16 : f32 to vector<16x98xf32>
    %31 = arith.addf %29, %30 : vector<16x98xf32>
    %32 = arith.mulf %31, %21 : vector<16x98xf32>
    %cst_17 = arith.constant 0.254829586 : f32
    %33 = vector.broadcast %cst_17 : f32 to vector<16x98xf32>
    %34 = arith.addf %32, %33 : vector<16x98xf32>
    %35 = arith.mulf %34, %21 : vector<16x98xf32>
    %cst_18 = arith.constant 0.000000e+00 : f32
    %36 = vector.broadcast %cst_18 : f32 to vector<16x98xf32>
    %37 = arith.subf %36, %15 : vector<16x98xf32>
    %38 = arith.mulf %37, %15 : vector<16x98xf32>
    %39 = math.exp %38 : vector<16x98xf32>
    %40 = arith.mulf %35, %39 : vector<16x98xf32>
    %cst_19 = arith.constant 1.000000e+00 : f32
    %41 = vector.broadcast %cst_19 : f32 to vector<16x98xf32>
    %42 = arith.subf %41, %40 : vector<16x98xf32>
    %43 = arith.mulf %14, %42 : vector<16x98xf32>
    %cst_20 = arith.constant 1.000000e+00 : f32
    %44 = vector.broadcast %cst_20 : f32 to vector<16x98xf32>
    %45 = arith.addf %44, %43 : vector<16x98xf32>
    %46 = arith.mulf %7, %45 : vector<16x98xf32>
    %c0_21 = arith.constant 0 : index
    %c0_22 = arith.constant 0 : index
    %47 = vector.load %arg4[%c0_21, %c0_22] : memref<16x98xf32, #tpu.memory_space<vmem>>, vector<16x98xf32>
    tpu.vector_store %arg4[%c0_21, %c0_22], %46 {strides = array<i32>} : memref<16x98xf32, #tpu.memory_space<vmem>>, vector<16x98xf32>,
    return
  }
  func.func @transform_0(%arg0: i32) -> (i32, i32) {
    %c0_i32 = arith.constant 0 : i32
    %c0_i32_0 = arith.constant 0 : i32
    %c0_i32_1 = arith.constant 0 : i32
    return %c0_i32, %c0_i32_0 : i32, i32
  }
  func.func @transform_1(%arg0: i32) -> (i32, i32) {
    %c0_i32 = arith.constant 0 : i32
    %c0_i32_0 = arith.constant 0 : i32
    %c0_i32_1 = arith.constant 0 : i32
    return %c0_i32, %c0_i32_0 : i32, i32
  }
  func.func @transform_2(%arg0: i32) -> (i32, i32) {
    %c0_i32 = arith.constant 0 : i32
    %c0_i32_0 = arith.constant 0 : i32
    %c0_i32_1 = arith.constant 0 : i32
    return %c0_i32, %c0_i32_0 : i32, i32
  }
  func.func @transform_3(%arg0: i32) -> (i32, i32) {
    %c0_i32 = arith.constant 0 : i32
    %c0_i32_0 = arith.constant 0 : i32
    %c0_i32_1 = arith.constant 0 : i32
    return %c0_i32, %c0_i32_0 : i32, i32
  }
}

module attributes {stable_mosaic.version = 11 : i64} {
  func.func @_gemm_bias_act_kernel(%arg0: i32, %arg1: memref<32x64xbf16, #tpu.memory_space<vmem>>, %arg2: memref<64x98xbf16, #tpu.memory_space<vmem>>, %arg3: memref<32x1xf32, #tpu.memory_space<vmem>>, %arg4: memref<32x98xf32, #tpu.memory_space<vmem>>) attributes {dimension_semantics = [#tpu.dimension_semantics<arbitrary>], iteration_bounds = array<i64: 1>, scalar_prefetch = 0 : i64, scratch_operands = 0 : i64, tpu.core_type = #tpu.core_type<tc>, window_params = [{pipeline_mode = #tpu.pipeline_mode<synchronous>, transform_indices = @transform_0, window_bounds = array<i64: 32, 64>}, {pipeline_mode = #tpu.pipeline_mode<synchronous>, transform_indices = @transform_1, window_bounds = array<i64: 64, 98>}, {pipeline_mode = #tpu.pipeline_mode<synchronous>, transform_indices = @transform_2, window_bounds = array<i64: 32, 1>}, {pipeline_mode = #tpu.pipeline_mode<synchronous>, transform_indices = @transform_3, window_bounds = array<i64: 32, 98>}]} {
    %c0 = arith.constant 0 : index
    %c0_0 = arith.constant 0 : index
    %0 = vector.load %arg1[%c0, %c0_0] : memref<32x64xbf16, #tpu.memory_space<vmem>>, vector<32x64xbf16>
    %c0_1 = arith.constant 0 : index
    %c0_2 = arith.constant 0 : index
    %1 = vector.load %arg2[%c0_1, %c0_2] : memref<64x98xbf16, #tpu.memory_space<vmem>>, vector<64x98xbf16>
    %cst = arith.constant dense<0.000000e+00> : vector<32x98xf32>
    %2 = tpu.matmul %0, %1, %cst {dimension_numbers = #tpu.dot_dimension_numbers<[1], [0], [0], [1], [0, 0, 1, 1], [], []>} : vector<32x64xbf16>, vector<64x98xbf16>, vector<32x98xf32> -> vector<32x98xf32>
    %c0_3 = arith.constant 0 : index
    %c0_4 = arith.constant 0 : index
    %3 = vector.load %arg3[%c0_3, %c0_4] : memref<32x1xf32, #tpu.memory_space<vmem>>, vector<32x1xf32>
    %4 = vector.broadcast %3 : vector<32x1xf32> to vector<32x98xf32>
    %5 = arith.addf %2, %4 : vector<32x98xf32>
    %cst_5 = arith.constant 5.000000e-01 : f32
    %6 = vector.broadcast %cst_5 : f32 to vector<32x98xf32>
    %7 = arith.mulf %6, %5 : vector<32x98xf32>
    %cst_6 = arith.constant 0.707106769 : f32
    %8 = vector.broadcast %cst_6 : f32 to vector<32x98xf32>
    %9 = arith.mulf %5, %8 : vector<32x98xf32>
    %cst_7 = arith.constant 0.000000e+00 : f32
    %10 = vector.broadcast %cst_7 : f32 to vector<32x98xf32>
    %11 = arith.cmpf oge, %9, %10 : vector<32x98xf32>
    %cst_8 = arith.constant 1.000000e+00 : f32
    %cst_9 = arith.constant -1.000000e+00 : f32
    %12 = vector.broadcast %cst_8 : f32 to vector<32x98xf32>
    %13 = vector.broadcast %cst_9 : f32 to vector<32x98xf32>
    %14 = arith.select %11, %12, %13 : vector<32x98xi1>, vector<32x98xf32>
    %15 = math.absf %9 : vector<32x98xf32>
    %cst_10 = arith.constant 0.327591091 : f32
    %16 = vector.broadcast %cst_10 : f32 to vector<32x98xf32>
    %17 = arith.mulf %16, %15 : vector<32x98xf32>
    %cst_11 = arith.constant 1.000000e+00 : f32
    %18 = vector.broadcast %cst_11 : f32 to vector<32x98xf32>
    %19 = arith.addf %18, %17 : vector<32x98xf32>
    %cst_12 = arith.constant 1.000000e+00 : f32
    %20 = vector.broadcast %cst_12 : f32 to vector<32x98xf32>
    %21 = arith.divf %20, %19 : vector<32x98xf32>
    %cst_13 = arith.constant 1.06140542 : f32
    %22 = vector.broadcast %cst_13 : f32 to vector<32x98xf32>
    %23 = arith.mulf %22, %21 : vector<32x98xf32>
    %cst_14 = arith.constant -1.45315206 : f32
    %24 = vector.broadcast %cst_14 : f32 to vector<32x98xf32>
    %25 = arith.addf %23, %24 : vector<32x98xf32>
    %26 = arith.mulf %25, %21 : vector<32x98xf32>
    %cst_15 = arith.constant 1.42141378 : f32
    %27 = vector.broadcast %cst_15 : f32 to vector<32x98xf32>
    %28 = arith.addf %26, %27 : vector<32x98xf32>
    %29 = arith.mulf %28, %21 : vector<32x98xf32>
    %cst_16 = arith.constant -0.284496725 : f32
    %30 = vector.broadcast %cst_16 : f32 to vector<32x98xf32>
    %31 = arith.addf %29, %30 : vector<32x98xf32>
    %32 = arith.mulf %31, %21 : vector<32x98xf32>
    %cst_17 = arith.constant 0.254829586 : f32
    %33 = vector.broadcast %cst_17 : f32 to vector<32x98xf32>
    %34 = arith.addf %32, %33 : vector<32x98xf32>
    %35 = arith.mulf %34, %21 : vector<32x98xf32>
    %cst_18 = arith.constant 0.000000e+00 : f32
    %36 = vector.broadcast %cst_18 : f32 to vector<32x98xf32>
    %37 = arith.subf %36, %15 : vector<32x98xf32>
    %38 = arith.mulf %37, %15 : vector<32x98xf32>
    %39 = math.exp %38 : vector<32x98xf32>
    %40 = arith.mulf %35, %39 : vector<32x98xf32>
    %cst_19 = arith.constant 1.000000e+00 : f32
    %41 = vector.broadcast %cst_19 : f32 to vector<32x98xf32>
    %42 = arith.subf %41, %40 : vector<32x98xf32>
    %43 = arith.mulf %14, %42 : vector<32x98xf32>
    %cst_20 = arith.constant 1.000000e+00 : f32
    %44 = vector.broadcast %cst_20 : f32 to vector<32x98xf32>
    %45 = arith.addf %44, %43 : vector<32x98xf32>
    %46 = arith.mulf %7, %45 : vector<32x98xf32>
    %c0_21 = arith.constant 0 : index
    %c0_22 = arith.constant 0 : index
    %47 = vector.load %arg4[%c0_21, %c0_22] : memref<32x98xf32, #tpu.memory_space<vmem>>, vector<32x98xf32>
    tpu.vector_store %arg4[%c0_21, %c0_22], %46 {strides = array<i32>} : memref<32x98xf32, #tpu.memory_space<vmem>>, vector<32x98xf32>,
    return
  }
  func.func @transform_0(%arg0: i32) -> (i32, i32) {
    %c0_i32 = arith.constant 0 : i32
    %c0_i32_0 = arith.constant 0 : i32
    %c0_i32_1 = arith.constant 0 : i32
    return %c0_i32, %c0_i32_0 : i32, i32
  }
  func.func @transform_1(%arg0: i32) -> (i32, i32) {
    %c0_i32 = arith.constant 0 : i32
    %c0_i32_0 = arith.constant 0 : i32
    %c0_i32_1 = arith.constant 0 : i32
    return %c0_i32, %c0_i32_0 : i32, i32
  }
  func.func @transform_2(%arg0: i32) -> (i32, i32) {
    %c0_i32 = arith.constant 0 : i32
    %c0_i32_0 = arith.constant 0 : i32
    %c0_i32_1 = arith.constant 0 : i32
    return %c0_i32, %c0_i32_0 : i32, i32
  }
  func.func @transform_3(%arg0: i32) -> (i32, i32) {
    %c0_i32 = arith.constant 0 : i32
    %c0_i32_0 = arith.constant 0 : i32
    %c0_i32_1 = arith.constant 0 : i32
    return %c0_i32, %c0_i32_0 : i32, i32
  }
}

module attributes {stable_mosaic.version = 11 : i64} {
  func.func @_gemm_bias_act_kernel(%arg0: i32, %arg1: memref<8x72xbf16, #tpu.memory_space<vmem>>, %arg2: memref<72x392xbf16, #tpu.memory_space<vmem>>, %arg3: memref<8x1xf32, #tpu.memory_space<vmem>>, %arg4: memref<8x392xf32, #tpu.memory_space<vmem>>) attributes {dimension_semantics = [#tpu.dimension_semantics<arbitrary>], iteration_bounds = array<i64: 1>, scalar_prefetch = 0 : i64, scratch_operands = 0 : i64, tpu.core_type = #tpu.core_type<tc>, window_params = [{pipeline_mode = #tpu.pipeline_mode<synchronous>, transform_indices = @transform_0, window_bounds = array<i64: 8, 72>}, {pipeline_mode = #tpu.pipeline_mode<synchronous>, transform_indices = @transform_1, window_bounds = array<i64: 72, 392>}, {pipeline_mode = #tpu.pipeline_mode<synchronous>, transform_indices = @transform_2, window_bounds = array<i64: 8, 1>}, {pipeline_mode = #tpu.pipeline_mode<synchronous>, transform_indices = @transform_3, window_bounds = array<i64: 8, 392>}]} {
    %c0 = arith.constant 0 : index
    %c0_0 = arith.constant 0 : index
    %0 = vector.load %arg1[%c0, %c0_0] : memref<8x72xbf16, #tpu.memory_space<vmem>>, vector<8x72xbf16>
    %c0_1 = arith.constant 0 : index
    %c0_2 = arith.constant 0 : index
    %1 = vector.load %arg2[%c0_1, %c0_2] : memref<72x392xbf16, #tpu.memory_space<vmem>>, vector<72x392xbf16>
    %cst = arith.constant dense<0.000000e+00> : vector<8x392xf32>
    %2 = tpu.matmul %0, %1, %cst {dimension_numbers = #tpu.dot_dimension_numbers<[1], [0], [0], [1], [0, 0, 1, 1], [], []>} : vector<8x72xbf16>, vector<72x392xbf16>, vector<8x392xf32> -> vector<8x392xf32>
    %c0_3 = arith.constant 0 : index
    %c0_4 = arith.constant 0 : index
    %3 = vector.load %arg3[%c0_3, %c0_4] : memref<8x1xf32, #tpu.memory_space<vmem>>, vector<8x1xf32>
    %4 = vector.broadcast %3 : vector<8x1xf32> to vector<8x392xf32>
    %5 = arith.addf %2, %4 : vector<8x392xf32>
    %cst_5 = arith.constant 5.000000e-01 : f32
    %6 = vector.broadcast %cst_5 : f32 to vector<8x392xf32>
    %7 = arith.mulf %6, %5 : vector<8x392xf32>
    %cst_6 = arith.constant 0.707106769 : f32
    %8 = vector.broadcast %cst_6 : f32 to vector<8x392xf32>
    %9 = arith.mulf %5, %8 : vector<8x392xf32>
    %cst_7 = arith.constant 0.000000e+00 : f32
    %10 = vector.broadcast %cst_7 : f32 to vector<8x392xf32>
    %11 = arith.cmpf oge, %9, %10 : vector<8x392xf32>
    %cst_8 = arith.constant 1.000000e+00 : f32
    %cst_9 = arith.constant -1.000000e+00 : f32
    %12 = vector.broadcast %cst_8 : f32 to vector<8x392xf32>
    %13 = vector.broadcast %cst_9 : f32 to vector<8x392xf32>
    %14 = arith.select %11, %12, %13 : vector<8x392xi1>, vector<8x392xf32>
    %15 = math.absf %9 : vector<8x392xf32>
    %cst_10 = arith.constant 0.327591091 : f32
    %16 = vector.broadcast %cst_10 : f32 to vector<8x392xf32>
    %17 = arith.mulf %16, %15 : vector<8x392xf32>
    %cst_11 = arith.constant 1.000000e+00 : f32
    %18 = vector.broadcast %cst_11 : f32 to vector<8x392xf32>
    %19 = arith.addf %18, %17 : vector<8x392xf32>
    %cst_12 = arith.constant 1.000000e+00 : f32
    %20 = vector.broadcast %cst_12 : f32 to vector<8x392xf32>
    %21 = arith.divf %20, %19 : vector<8x392xf32>
    %cst_13 = arith.constant 1.06140542 : f32
    %22 = vector.broadcast %cst_13 : f32 to vector<8x392xf32>
    %23 = arith.mulf %22, %21 : vector<8x392xf32>
    %cst_14 = arith.constant -1.45315206 : f32
    %24 = vector.broadcast %cst_14 : f32 to vector<8x392xf32>
    %25 = arith.addf %23, %24 : vector<8x392xf32>
    %26 = arith.mulf %25, %21 : vector<8x392xf32>
    %cst_15 = arith.constant 1.42141378 : f32
    %27 = vector.broadcast %cst_15 : f32 to vector<8x392xf32>
    %28 = arith.addf %26, %27 : vector<8x392xf32>
    %29 = arith.mulf %28, %21 : vector<8x392xf32>
    %cst_16 = arith.constant -0.284496725 : f32
    %30 = vector.broadcast %cst_16 : f32 to vector<8x392xf32>
    %31 = arith.addf %29, %30 : vector<8x392xf32>
    %32 = arith.mulf %31, %21 : vector<8x392xf32>
    %cst_17 = arith.constant 0.254829586 : f32
    %33 = vector.broadcast %cst_17 : f32 to vector<8x392xf32>
    %34 = arith.addf %32, %33 : vector<8x392xf32>
    %35 = arith.mulf %34, %21 : vector<8x392xf32>
    %cst_18 = arith.constant 0.000000e+00 : f32
    %36 = vector.broadcast %cst_18 : f32 to vector<8x392xf32>
    %37 = arith.subf %36, %15 : vector<8x392xf32>
    %38 = arith.mulf %37, %15 : vector<8x392xf32>
    %39 = math.exp %38 : vector<8x392xf32>
    %40 = arith.mulf %35, %39 : vector<8x392xf32>
    %cst_19 = arith.constant 1.000000e+00 : f32
    %41 = vector.broadcast %cst_19 : f32 to vector<8x392xf32>
    %42 = arith.subf %41, %40 : vector<8x392xf32>
    %43 = arith.mulf %14, %42 : vector<8x392xf32>
    %cst_20 = arith.constant 1.000000e+00 : f32
    %44 = vector.broadcast %cst_20 : f32 to vector<8x392xf32>
    %45 = arith.addf %44, %43 : vector<8x392xf32>
    %46 = arith.mulf %7, %45 : vector<8x392xf32>
    %c0_21 = arith.constant 0 : index
    %c0_22 = arith.constant 0 : index
    %47 = vector.load %arg4[%c0_21, %c0_22] : memref<8x392xf32, #tpu.memory_space<vmem>>, vector<8x392xf32>
    tpu.vector_store %arg4[%c0_21, %c0_22], %46 {strides = array<i32>} : memref<8x392xf32, #tpu.memory_space<vmem>>, vector<8x392xf32>,
    return
  }
  func.func @transform_0(%arg0: i32) -> (i32, i32) {
    %c0_i32 = arith.constant 0 : i32
    %c0_i32_0 = arith.constant 0 : i32
    %c0_i32_1 = arith.constant 0 : i32
    return %c0_i32, %c0_i32_0 : i32, i32
  }
  func.func @transform_1(%arg0: i32) -> (i32, i32) {
    %c0_i32 = arith.constant 0 : i32
    %c0_i32_0 = arith.constant 0 : i32
    %c0_i32_1 = arith.constant 0 : i32
    return %c0_i32, %c0_i32_0 : i32, i32
  }
  func.func @transform_2(%arg0: i32) -> (i32, i32) {
    %c0_i32 = arith.constant 0 : i32
    %c0_i32_0 = arith.constant 0 : i32
    %c0_i32_1 = arith.constant 0 : i32
    return %c0_i32, %c0_i32_0 : i32, i32
  }
  func.func @transform_3(%arg0: i32) -> (i32, i32) {
    %c0_i32 = arith.constant 0 : i32
    %c0_i32_0 = arith.constant 0 : i32
    %c0_i32_1 = arith.constant 0 : i32
    return %c0_i32, %c0_i32_0 : i32, i32
  }
}

module attributes {stable_mosaic.version = 11 : i64} {
  func.func @_gemm_bias_act_kernel(%arg0: i32, %arg1: memref<16x32xbf16, #tpu.memory_space<vmem>>, %arg2: memref<32x392xbf16, #tpu.memory_space<vmem>>, %arg3: memref<16x1xf32, #tpu.memory_space<vmem>>, %arg4: memref<16x392xf32, #tpu.memory_space<vmem>>) attributes {dimension_semantics = [#tpu.dimension_semantics<arbitrary>], iteration_bounds = array<i64: 1>, scalar_prefetch = 0 : i64, scratch_operands = 0 : i64, tpu.core_type = #tpu.core_type<tc>, window_params = [{pipeline_mode = #tpu.pipeline_mode<synchronous>, transform_indices = @transform_0, window_bounds = array<i64: 16, 32>}, {pipeline_mode = #tpu.pipeline_mode<synchronous>, transform_indices = @transform_1, window_bounds = array<i64: 32, 392>}, {pipeline_mode = #tpu.pipeline_mode<synchronous>, transform_indices = @transform_2, window_bounds = array<i64: 16, 1>}, {pipeline_mode = #tpu.pipeline_mode<synchronous>, transform_indices = @transform_3, window_bounds = array<i64: 16, 392>}]} {
    %c0 = arith.constant 0 : index
    %c0_0 = arith.constant 0 : index
    %0 = vector.load %arg1[%c0, %c0_0] : memref<16x32xbf16, #tpu.memory_space<vmem>>, vector<16x32xbf16>
    %c0_1 = arith.constant 0 : index
    %c0_2 = arith.constant 0 : index
    %1 = vector.load %arg2[%c0_1, %c0_2] : memref<32x392xbf16, #tpu.memory_space<vmem>>, vector<32x392xbf16>
    %cst = arith.constant dense<0.000000e+00> : vector<16x392xf32>
    %2 = tpu.matmul %0, %1, %cst {dimension_numbers = #tpu.dot_dimension_numbers<[1], [0], [0], [1], [0, 0, 1, 1], [], []>} : vector<16x32xbf16>, vector<32x392xbf16>, vector<16x392xf32> -> vector<16x392xf32>
    %c0_3 = arith.constant 0 : index
    %c0_4 = arith.constant 0 : index
    %3 = vector.load %arg3[%c0_3, %c0_4] : memref<16x1xf32, #tpu.memory_space<vmem>>, vector<16x1xf32>
    %4 = vector.broadcast %3 : vector<16x1xf32> to vector<16x392xf32>
    %5 = arith.addf %2, %4 : vector<16x392xf32>
    %c0_5 = arith.constant 0 : index
    %c0_6 = arith.constant 0 : index
    %6 = vector.load %arg4[%c0_5, %c0_6] : memref<16x392xf32, #tpu.memory_space<vmem>>, vector<16x392xf32>
    tpu.vector_store %arg4[%c0_5, %c0_6], %5 {strides = array<i32>} : memref<16x392xf32, #tpu.memory_space<vmem>>, vector<16x392xf32>,
    return
  }
  func.func @transform_0(%arg0: i32) -> (i32, i32) {
    %c0_i32 = arith.constant 0 : i32
    %c0_i32_0 = arith.constant 0 : i32
    %c0_i32_1 = arith.constant 0 : i32
    return %c0_i32, %c0_i32_0 : i32, i32
  }
  func.func @transform_1(%arg0: i32) -> (i32, i32) {
    %c0_i32 = arith.constant 0 : i32
    %c0_i32_0 = arith.constant 0 : i32
    %c0_i32_1 = arith.constant 0 : i32
    return %c0_i32, %c0_i32_0 : i32, i32
  }
  func.func @transform_2(%arg0: i32) -> (i32, i32) {
    %c0_i32 = arith.constant 0 : i32
    %c0_i32_0 = arith.constant 0 : i32
    %c0_i32_1 = arith.constant 0 : i32
    return %c0_i32, %c0_i32_0 : i32, i32
  }
  func.func @transform_3(%arg0: i32) -> (i32, i32) {
    %c0_i32 = arith.constant 0 : i32
    %c0_i32_0 = arith.constant 0 : i32
    %c0_i32_1 = arith.constant 0 : i32
    return %c0_i32, %c0_i32_0 : i32, i32
  }
}

</mosaic_0001>

<bundles_post_ra>
// kernel: tile.28
= control target key start
LH: loop header
LB: loop body
LE: loop exit
PB: predicated region body
PF: predicated region fallthrough
CT: control target
= control target key end

     0   :  { %s22_s0 = inlined_call_operand.vmem [shape: f32[4], index: 0, kind: input, shape index: {}]   ;;  %s23_s1 = inlined_call_operand.vmem [shape: f32[4,4], index: 1, kind: output, shape index: {}]  }
   0x1   :  { %v4_v0 = vld [vmem:[%s22_s0] ss:$0 sm:$0xff] }
   0x2   :  { %5 = vst [vmem:[%s23_s1] sm:$0xf] %v4_v0 }

// kernel: tile.18
= control target key start
LH: loop header
LB: loop body
LE: loop exit
PB: predicated region body
PF: predicated region fallthrough
CT: control target
= control target key end

     0   :  { %s22_s0 = inlined_call_operand.vmem [shape: f32[16], index: 0, kind: input, shape index: {}]   ;;  %s23_s1 = inlined_call_operand.vmem [shape: f32[4,16], index: 1, kind: output, shape index: {}]  }
   0x1   :  { %v4_v0 = vld [vmem:[%s22_s0] ss:$0 sm:$0xff] }
   0x2   :  { %5 = vst [vmem:[%s23_s1] sm:$0xf] %v4_v0 }

// kernel: tile.23
= control target key start
LH: loop header
LB: loop body
LE: loop exit
PB: predicated region body
PF: predicated region fallthrough
CT: control target
= control target key end

     0   :  { %s22_s0 = inlined_call_operand.vmem [shape: f32[8], index: 0, kind: input, shape index: {}]   ;;  %s23_s1 = inlined_call_operand.vmem [shape: f32[4,8], index: 1, kind: output, shape index: {}]  }
   0x1   :  { %v4_v0 = vld [vmem:[%s22_s0] ss:$0 sm:$0xff] }
   0x2   :  { %5 = vst [vmem:[%s23_s1] sm:$0xf] %v4_v0 }

// kernel: tile.2
= control target key start
LH: loop header
LB: loop body
LE: loop exit
PB: predicated region body
PF: predicated region fallthrough
CT: control target
= control target key end

     0   :  { %s35_s8 = smov 125   ;;  %vm8_vm0 = vcmask 7168   ;;  %s36_s11 = smov 126   ;;  %s62_s0 = inlined_call_operand.vmem [shape: f32[4,4], index: 0, kind: input, shape index: {}]   ;;  %s63_s1 = inlined_call_operand.vmem [shape: f32[16,1], index: 1, kind: output, shape index: {}]  }
   0x1   :  { %v5_v0 = vld [vmem:[%s62_s0] sm:$0xf]  ;;  %s34_s0 = smov 127  }
   0x2   :  { %6 = vst [vmem:[#allocation0] sm:$0xf] %v5_v0 }
   0x9   :  { %v10_v1 = vld [vmem:[#allocation0] sm:$0xf]  }
   0xa   :  { %v22_v2 = vld [vmem:[#allocation0] sm:$0xf]   ;;  %11 = vrot.lane.b32.xlu0 %v10_v1, %s34_s0 }
   0xb   :  { %23 = vrot.lane.b32.xlu1 %v22_v2, %s35_s8  ;;  %v7_v3 = vld [vmem:[#allocation0] sm:$0xf]  }
   0xc   :  { %v16_v4 = vld [vmem:[#allocation0] sm:$0xf]   ;;  %9 = vst.msk [vmem:[%s63_s1] ss:$4 sm:$0xf] %vm8_vm0, %v7_v3  }
   0xe   :  { %17 = vrot.lane.b32.xlu0 %v16_v4, %s36_s11 }
  0x7c   :  { %v12_v5 = vpop.permute.xlu0 %11  }
  0x7d   :  { %v24_v6 = vpop.permute.xlu1 %23   ;;  %28 = vst.msk [vmem:[%s63_s1 + $0x1] ss:$4 sm:$0xf] %vm8_vm0, %v12_v5  }
  0x7e   :  { %30 = vst.msk [vmem:[%s63_s1 + $0x3] ss:$4 sm:$0xf] %vm8_vm0, %v24_v6  }
  0x80   :  { %v18_v7 = vpop.permute.xlu0 %17  }
  0x81   :  { %29 = vst.msk [vmem:[%s63_s1 + $0x2] ss:$4 sm:$0xf] %vm8_vm0, %v18_v7  }

// kernel: tile.1
= control target key start
LH: loop header
LB: loop body
LE: loop exit
PB: predicated region body
PF: predicated region fallthrough
CT: control target
= control target key end

     0   :  { %s67_s8 = smov 125   ;;  %vm8_vm0 = vcmask 7168   ;;  %s68_s11 = smov 126   ;;  %s118_s0 = inlined_call_operand.vmem [shape: f32[4,8], index: 0, kind: input, shape index: {}]   ;;  %s119_s1 = inlined_call_operand.vmem [shape: f32[32,1], index: 1, kind: output, shape index: {}]  }
   0x1   :  { %v5_v0 = vld [vmem:[%s118_s0] sm:$0xf]  ;;  %s66_s0 = smov 127   ;;  %s69_s12 = smov 124  }
   0x2   :  { %6 = vst [vmem:[#allocation0] sm:$0xf] %v5_v0  ;;  %s70_s13 = smov 123   ;;  %s71_s14 = smov 122  }
   0x3   :  { %s72_s15 = smov 121  }
   0x9   :  { %v10_v1 = vld [vmem:[#allocation0] sm:$0xf]  }
   0xa   :  { %v22_v2 = vld [vmem:[#allocation0] sm:$0xf]   ;;  %11 = vrot.lane.b32.xlu0 %v10_v1, %s66_s0 }
   0xb   :  { %23 = vrot.lane.b32.xlu1 %v22_v2, %s67_s8  ;;  %v16_v3 = vld [vmem:[#allocation0] sm:$0xf]  }
   0xc   :  { %v28_v4 = vld [vmem:[#allocation0] sm:$0xf]  }
   0xd   :  { %v7_v5 = vld [vmem:[#allocation0] sm:$0xf]  }
   0xe   :  { %9 = vst.msk [vmem:[%s119_s1] ss:$8 sm:$0xf] %vm8_vm0, %v7_v5   ;;  %17 = vrot.lane.b32.xlu0 %v16_v3, %s68_s11  ;;  %v34_v6 = vld [vmem:[#allocation0] sm:$0xf]  }
   0xf   :  { %29 = vrot.lane.b32.xlu1 %v28_v4, %s69_s12  ;;  %v40_v7 = vld [vmem:[#allocation0] sm:$0xf]  }
  0x10   :  { %v46_v8 = vld [vmem:[#allocation0] sm:$0xf]  }
  0x12   :  { %35 = vrot.lane.b32.xlu0 %v34_v6, %s70_s13 }
  0x13   :  { %41 = vrot.lane.b32.xlu1 %v40_v7, %s71_s14 }
  0x16   :  { %47 = vrot.lane.b32.xlu0 %v46_v8, %s72_s15 }
  0x7c   :  { %v12_v9 = vpop.permute.xlu0 %11  }
  0x7d   :  { %v24_v10 = vpop.permute.xlu1 %23   ;;  %52 = vst.msk [vmem:[%s119_s1 + $0x1] ss:$8 sm:$0xf] %vm8_vm0, %v12_v9  }
  0x7e   :  { %54 = vst.msk [vmem:[%s119_s1 + $0x3] ss:$8 sm:$0xf] %vm8_vm0, %v24_v10  }
  0x80   :  { %v18_v11 = vpop.permute.xlu0 %17  }
  0x81   :  { %v30_v12 = vpop.permute.xlu1 %29   ;;  %53 = vst.msk [vmem:[%s119_s1 + $0x2] ss:$8 sm:$0xf] %vm8_vm0, %v18_v11  }
  0x82   :  { %55 = vst.msk [vmem:[%s119_s1 + $0x4] ss:$8 sm:$0xf] %vm8_vm0, %v30_v12  }
  0x84   :  { %v36_v13 = vpop.permute.xlu0 %35  }
  0x85   :  { %v42_v14 = vpop.permute.xlu1 %41   ;;  %56 = vst.msk [vmem:[%s119_s1 + $0x5] ss:$8 sm:$0xf] %vm8_vm0, %v36_v13  }
  0x86   :  { %57 = vst.msk [vmem:[%s119_s1 + $0x6] ss:$8 sm:$0xf] %vm8_vm0, %v42_v14  }
  0x88   :  { %v48_v15 = vpop.permute.xlu0 %47  }
  0x89   :  { %58 = vst.msk [vmem:[%s119_s1 + $0x7] ss:$8 sm:$0xf] %vm8_vm0, %v48_v15  }

// kernel: tile.0
= control target key start
LH: loop header
LB: loop body
LE: loop exit
PB: predicated region body
PF: predicated region fallthrough
CT: control target
= control target key end

     0   :  { %s177_s8 = smov 125   ;;  %s178_s9 = smov 126   ;;  %vm8_vm0 = vcmask 7168   ;;  %s332_s0 = inlined_call_operand.vmem [shape: f32[4,16], index: 0, kind: input, shape index: {}]   ;;  %s333_s1 = inlined_call_operand.vmem [shape: f32[64,1], index: 1, kind: output, shape index: {}]  }
   0x1   :  { %v5_v0 = vld [vmem:[%s332_s0] sm:$0xf]  ;;  %s176_s0 = smov 127   ;;  %s179_s10 = smov 124  }
   0x2   :  { %6 = vst [vmem:[#allocation0] sm:$0xf] %v5_v0  ;;  %s180_s11 = smov 123   ;;  %s181_s12 = smov 122  }
   0x3   :  { %s182_s13 = smov 121   ;;  %s183_s14 = smov 120  }
   0x4   :  { %s184_s19 = smov 119   ;;  %s185_s20 = smov 118  }
   0x5   :  { %s186_s21 = smov 117   ;;  %s187_s22 = smov 116  }
   0x6   :  { %s188_s23 = smov 115   ;;  %s189_s24 = smov 114  }
   0x7   :  { %s190_s25 = smov 113  }
   0x9   :  { %v11_v1 = vld [vmem:[#allocation0] sm:$0xf]  }
   0xa   :  { %v27_v2 = vld [vmem:[#allocation0] sm:$0xf]   ;;  %12 = vrot.lane.b32.xlu0 %v11_v1, %s176_s0 }
   0xb   :  { %28 = vrot.lane.b32.xlu1 %v27_v2, %s177_s8  ;;  %v19_v3 = vld [vmem:[#allocation0] sm:$0xf]  }
   0xc   :  { %v35_v4 = vld [vmem:[#allocation0] sm:$0xf]  }
   0xd   :  { %v43_v5 = vld [vmem:[#allocation0] sm:$0xf]  }
   0xe   :  { %20 = vrot.lane.b32.xlu0 %v19_v3, %s178_s9  ;;  %v51_v6 = vld [vmem:[#allocation0] sm:$0xf]  }
   0xf   :  { %36 = vrot.lane.b32.xlu1 %v35_v4, %s179_s10  ;;  %v59_v7 = vld [vmem:[#allocation0] sm:$0xf]  }
  0x10   :  { %v67_v8 = vld [vmem:[#allocation0] sm:$0xf]  }
  0x11   :  { %v75_v9 = vld [vmem:[#allocation0] sm:$0xf]  }
  0x12   :  { %44 = vrot.lane.b32.xlu0 %v43_v5, %s180_s11  ;;  %v83_v10 = vld [vmem:[#allocation0] sm:$0xf]  }
  0x13   :  { %52 = vrot.lane.b32.xlu1 %v51_v6, %s181_s12  ;;  %v7_v11 = vld [vmem:[#allocation0] sm:$0xf]  }
  0x14   :  { %9 = vst.msk [vmem:[%s333_s1] ss:$16 sm:$0x3] %vm8_vm0, %v7_v11   ;;  %10 = vst.msk [vmem:[%s333_s1] ss:$16 sm:$0xc] %vm8_vm0, %v7_v11  }
  0x15   :  { %v91_v12 = vld [vmem:[#allocation0] sm:$0xf]  }
  0x16   :  { %60 = vrot.lane.b32.xlu0 %v59_v7, %s182_s13  ;;  %v99_v13 = vld [vmem:[#allocation0] sm:$0xf]  }
  0x17   :  { %68 = vrot.lane.b32.xlu1 %v67_v8, %s183_s14  ;;  %v107_v14 = vld [vmem:[#allocation0] sm:$0xf]  }
  0x18   :  { %v115_v15 = vld [vmem:[#allocation0] sm:$0xf]  }
  0x19   :  { %v123_v16 = vld [vmem:[#allocation0] sm:$0xf]  }
  0x1a   :  { %76 = vrot.lane.b32.xlu0 %v75_v9, %s184_s19 }
  0x1b   :  { %84 = vrot.lane.b32.xlu1 %v83_v10, %s185_s20 }
  0x1e   :  { %92 = vrot.lane.b32.xlu0 %v91_v12, %s186_s21 }
  0x1f   :  { %100 = vrot.lane.b32.xlu1 %v99_v13, %s187_s22 }
  0x22   :  { %108 = vrot.lane.b32.xlu0 %v107_v14, %s188_s23 }
  0x23   :  { %116 = vrot.lane.b32.xlu1 %v115_v15, %s189_s24 }
  0x26   :  { %124 = vrot.lane.b32.xlu0 %v123_v16, %s190_s25 }
  0x7c   :  { %v13_v17 = vpop.permute.xlu0 %12  }
  0x7d   :  { %v29_v18 = vpop.permute.xlu1 %28   ;;  %131 = vst.msk [vmem:[%s333_s1 + $0x1] ss:$16 sm:$0x3] %vm8_vm0, %v13_v17   ;;  %132 = vst.msk [vmem:[%s333_s1 + $0x1] ss:$16 sm:$0xc] %vm8_vm0, %v13_v17  }
  0x7e   :  { %135 = vst.msk [vmem:[%s333_s1 + $0x3] ss:$16 sm:$0x3] %vm8_vm0, %v29_v18   ;;  %136 = vst.msk [vmem:[%s333_s1 + $0x3] ss:$16 sm:$0xc] %vm8_vm0, %v29_v18  }
  0x80   :  { %v21_v19 = vpop.permute.xlu0 %20  }
  0x81   :  { %v37_v20 = vpop.permute.xlu1 %36   ;;  %133 = vst.msk [vmem:[%s333_s1 + $0x2] ss:$16 sm:$0x3] %vm8_vm0, %v21_v19   ;;  %134 = vst.msk [vmem:[%s333_s1 + $0x2] ss:$16 sm:$0xc] %vm8_vm0, %v21_v19  }
  0x82   :  { %137 = vst.msk [vmem:[%s333_s1 + $0x4] ss:$16 sm:$0x3] %vm8_vm0, %v37_v20   ;;  %138 = vst.msk [vmem:[%s333_s1 + $0x4] ss:$16 sm:$0xc] %vm8_vm0, %v37_v20  }
  0x84   :  { %v45_v21 = vpop.permute.xlu0 %44  }
  0x85   :  { %v53_v22 = vpop.permute.xlu1 %52   ;;  %139 = vst.msk [vmem:[%s333_s1 + $0x5] ss:$16 sm:$0x3] %vm8_vm0, %v45_v21   ;;  %140 = vst.msk [vmem:[%s333_s1 + $0x5] ss:$16 sm:$0xc] %vm8_vm0, %v45_v21  }
  0x86   :  { %141 = vst.msk [vmem:[%s333_s1 + $0x6] ss:$16 sm:$0x3] %vm8_vm0, %v53_v22   ;;  %142 = vst.msk [vmem:[%s333_s1 + $0x6] ss:$16 sm:$0xc] %vm8_vm0, %v53_v22  }
  0x88   :  { %v61_v23 = vpop.permute.xlu0 %60  }
  0x89   :  { %v69_v24 = vpop.permute.xlu1 %68   ;;  %143 = vst.msk [vmem:[%s333_s1 + $0x7] ss:$16 sm:$0x3] %vm8_vm0, %v61_v23   ;;  %144 = vst.msk [vmem:[%s333_s1 + $0x7] ss:$16 sm:$0xc] %vm8_vm0, %v61_v23  }
  0x8a   :  { %145 = vst.msk [vmem:[%s333_s1 + $0x8] ss:$16 sm:$0x3] %vm8_vm0, %v69_v24   ;;  %146 = vst.msk [vmem:[%s333_s1 + $0x8] ss:$16 sm:$0xc] %vm8_vm0, %v69_v24  }
  0x8c   :  { %v77_v25 = vpop.permute.xlu0 %76  }
  0x8d   :  { %v85_v26 = vpop.permute.xlu1 %84   ;;  %147 = vst.msk [vmem:[%s333_s1 + $0x9] ss:$16 sm:$0x3] %vm8_vm0, %v77_v25   ;;  %148 = vst.msk [vmem:[%s333_s1 + $0x9] ss:$16 sm:$0xc] %vm8_vm0, %v77_v25  }
  0x8e   :  { %149 = vst.msk [vmem:[%s333_s1 + $0xa] ss:$16 sm:$0x3] %vm8_vm0, %v85_v26   ;;  %150 = vst.msk [vmem:[%s333_s1 + $0xa] ss:$16 sm:$0xc] %vm8_vm0, %v85_v26  }
  0x90   :  { %v93_v27 = vpop.permute.xlu0 %92  }
  0x91   :  { %v101_v28 = vpop.permute.xlu1 %100   ;;  %151 = vst.msk [vmem:[%s333_s1 + $0xb] ss:$16 sm:$0x3] %vm8_vm0, %v93_v27   ;;  %152 = vst.msk [vmem:[%s333_s1 + $0xb] ss:$16 sm:$0xc] %vm8_vm0, %v93_v27  }
  0x92   :  { %153 = vst.msk [vmem:[%s333_s1 + $0xc] ss:$16 sm:$0x3] %vm8_vm0, %v101_v28   ;;  %154 = vst.msk [vmem:[%s333_s1 + $0xc] ss:$16 sm:$0xc] %vm8_vm0, %v101_v28  }
  0x94   :  { %v109_v29 = vpop.permute.xlu0 %108  }
  0x95   :  { %v117_v30 = vpop.permute.xlu1 %116   ;;  %155 = vst.msk [vmem:[%s333_s1 + $0xd] ss:$16 sm:$0x3] %vm8_vm0, %v109_v29   ;;  %156 = vst.msk [vmem:[%s333_s1 + $0xd] ss:$16 sm:$0xc] %vm8_vm0, %v109_v29  }
  0x96   :  { %157 = vst.msk [vmem:[%s333_s1 + $0xe] ss:$16 sm:$0x3] %vm8_vm0, %v117_v30   ;;  %158 = vst.msk [vmem:[%s333_s1 + $0xe] ss:$16 sm:$0xc] %vm8_vm0, %v117_v30  }
  0x98   :  { %v125_v31 = vpop.permute.xlu0 %124  }
  0x99   :  { %159 = vst.msk [vmem:[%s333_s1 + $0xf] ss:$16 sm:$0x3] %vm8_vm0, %v125_v31   ;;  %160 = vst.msk [vmem:[%s333_s1 + $0xf] ss:$16 sm:$0xc] %vm8_vm0, %v125_v31  }

// kernel: cnn_decoder_forward.6
= control target key start
LH: loop header
LB: loop body
LE: loop exit
PB: predicated region body
PF: predicated region fallthrough
CT: control target
= control target key end

     0   :  { %v172_v1 = vmov 0   ;;  %vm40_vm0 = vcmask 130048   ;;  %v20_v4 = vlaneseq  ;;  %v173_v55 = vmov -1.0   ;;  %s209_s1 = inlined_call_operand.vmem [shape: bf16[16,256], index: 1, kind: input, shape index: {}]   ;;  %s210_s0 = inlined_call_operand.vmem [shape: bf16[2,16], index: 0, kind: input, shape index: {}]   ;;  %s211_s2 = inlined_call_operand.vmem [shape: f32[1,256], index: 2, kind: input, shape index: {}]   ;;  %s212_s3 = inlined_call_operand.vmem [shape: f32[2,256], index: 3, kind: output, shape index: {}]  }
   0x1   :  { %v161_v0 = vld [vmem:[%s209_s1 + $0x4] ss:$8 sps:$4 sm:$0xff]   ;;  %76 = vmatprep.mubr.bf16.mxu0 %v172_v1  ;;  %v163_v2 = vld [vmem:[%s209_s1] ss:$8 sps:$4 sm:$0xff]  }
   0x2   :  { %58 = vmatprep.subr.bf16.mxu0 %v161_v0  ;;  %v15_v3 = vld [vmem:[%s210_s0] sm:$0x1]  ;;  %v21_v5 = vshrl.u32 %v20_v4, 7 }
   0x3   :  { %59 = vmatpush1.bf16.msra.mxu0 %v163_v2  ;;  %v18_v7 = vld [vmem:[%s211_s2] sm:$0x3] }
   0x4   :  { %v22_v6 = vsub.s32 0, %v21_v5  ;;  %v26_v8 = vsub.s32 1, %v21_v5 }
   0x6   :  { %157 = vmatmul.mubr.msk.bf16.vlgmr.msra.gmra.mxu0 %vm40_vm0, %v15_v3  ;;  %v23_v9 = vrot.slane %v18_v7, %v22_v6  ;;  %v27_v10 = vrot.slane %v18_v7, %v26_v8 }
  0xc6   :  { %v78_v11 = vpop.f32.mrf.mxu0 }
  0xc7   :  { %v79_v12 = vadd.f32 %v78_v11, %v23_v9 }
  0xc8   :  { %v80_v13 = vpop.f32.mrf.mxu0 }
  0xc9   :  { %v87_v14 = vmul.f32 0.70710677, %v79_v12  ;;  %v81_v15 = vadd.f32 %v80_v13, %v27_v10  ;;  %v85_v63 = vmul.f32 0.5, %v79_v12 }
  0xca   :  { %v82_v16 = vpop.f32.mrf.mxu0 }
  0xcb   :  { %v93_v17 = vand.u32 2147483647, %v87_v14  ;;  %v88_v18 = vmul.f32 0.70710677, %v81_v15  ;;  %vm89_vm1 = vcmp.ge.f32.partialorder %v87_v14, 0.0  ;;  %v86_v0 = vmul.f32 0.5, %v81_v15 }
  0xcc   :  { %v83_v19 = vpop.f32.mrf.mxu0  ;;  %v91_v56 = vsel %vm89_vm1, 1.0, %v173_v55 }
  0xcd   :  { %v95_v20 = vmul.f32 0.3275911, %v93_v17  ;;  %v94_v21 = vand.u32 2147483647, %v88_v18  ;;  %v121_v25 = vsub.f32 0.0, %v93_v17  ;;  %vm90_vm2 = vcmp.ge.f32.partialorder %v88_v18, 0.0 }
  0xce   :  { %v92_v60 = vsel %vm90_vm2, 1.0, %v173_v55 }
  0xcf   :  { %v97_v22 = vadd.f32 1.0, %v95_v20  ;;  %v96_v23 = vmul.f32 0.3275911, %v94_v21  ;;  %v122_v26 = vsub.f32 0.0, %v94_v21  ;;  %v123_v27 = vmul.f32 %v121_v25, %v93_v17 }
  0xd1   :  { %164 = vrcp.f32 %v97_v22  ;;  %v98_v24 = vadd.f32 1.0, %v96_v23  ;;  %v124_v29 = vmul.f32 %v122_v26, %v94_v21  ;;  %v125_v31 = vmul.f32 1.442695, %v123_v27 }
  0xd3   :  { %166 = vrcp.f32 %v98_v24  ;;  %v127_v35 = vmul.f32 1.442695, %v124_v29 }
  0xd4   :  { %168 = vpow2.f32 %v125_v31 }
  0xd5   :  { %170 = vpow2.f32 %v127_v35 }
  0xde   :  { %v165_v28 = vpop.eup %164 }
  0xdf   :  { %v103_v30 = vmul.f32 1.0614054, %v165_v28 }
  0xe0   :  { %v167_v32 = vpop.eup %166 }
  0xe1   :  { %v105_v33 = vadd.f32 -1.4531521, %v103_v30  ;;  %v104_v34 = vmul.f32 1.0614054, %v167_v32  ;;  %v169_v49 = vpop.eup %168 }
  0xe2   :  { %v171_v53 = vpop.eup %170 }
  0xe3   :  { %v107_v36 = vmul.f32 %v165_v28, %v105_v33  ;;  %v106_v37 = vadd.f32 -1.4531521, %v104_v34 }
  0xe5   :  { %v109_v38 = vadd.f32 1.4214138, %v107_v36  ;;  %v108_v39 = vmul.f32 %v167_v32, %v106_v37 }
  0xe7   :  { %v111_v40 = vmul.f32 %v165_v28, %v109_v38  ;;  %v110_v41 = vadd.f32 1.4214138, %v108_v39 }
  0xe9   :  { %v113_v42 = vadd.f32 -0.28449672, %v111_v40  ;;  %v112_v43 = vmul.f32 %v167_v32, %v110_v41 }
  0xeb   :  { %v115_v44 = vmul.f32 %v165_v28, %v113_v42  ;;  %v114_v45 = vadd.f32 -0.28449672, %v112_v43 }
  0xed   :  { %v117_v46 = vadd.f32 0.2548296, %v115_v44  ;;  %v116_v47 = vmul.f32 %v167_v32, %v114_v45 }
  0xef   :  { %v119_v48 = vmul.f32 %v165_v28, %v117_v46  ;;  %v118_v50 = vadd.f32 0.2548296, %v116_v47 }
  0xf1   :  { %v129_v51 = vmul.f32 %v169_v49, %v119_v48  ;;  %v120_v52 = vmul.f32 %v167_v32, %v118_v50 }
  0xf3   :  { %v131_v54 = vsub.f32 1.0, %v129_v51  ;;  %v130_v57 = vmul.f32 %v171_v53, %v120_v52 }
  0xf5   :  { %v133_v58 = vmul.f32 %v131_v54, %v91_v56  ;;  %v132_v59 = vsub.f32 1.0, %v130_v57 }
  0xf7   :  { %v135_v61 = vadd.f32 1.0, %v133_v58  ;;  %v134_v62 = vmul.f32 %v132_v59, %v92_v60 }
  0xf9   :  { %v136_v1 = vadd.f32 1.0, %v134_v62  ;;  %v137_v2 = vmul.f32 %v135_v61, %v85_v63 }
  0xfb   :  { %v138_v3 = vmul.f32 %v136_v1, %v86_v0 }
  0xfd   :  { %v141_v4 = vcombine.low %v137_v2, %v138_v3 }
  0xff   :  { %158 = vst.sshfl [vmem:[%s212_s3] sm:$0x33 pattern:$0x76325410] %v141_v4 }

// kernel: cnn_decoder_forward.7
= control target key start
LH: loop header
LB: loop body
LE: loop exit
PB: predicated region body
PF: predicated region fallthrough
CT: control target
= control target key end

     0   :  { %v518_v1 = vmov 0   ;;  %vm123_vm0 = vcmask 523264   ;;  %vm417_vm4 = vcmask 261120   ;;  %s763_s1 = inlined_call_operand.vmem [shape: bf16[64,32], index: 1, kind: input, shape index: {}]   ;;  %s764_s0 = inlined_call_operand.vmem [shape: bf16[64,64], index: 0, kind: input, shape index: {}]   ;;  %s765_s2 = inlined_call_operand.vmem [shape: f32[64,1], index: 2, kind: input, shape index: {}]   ;;  %s766_s3 = inlined_call_operand.vmem [shape: f32[64,32], index: 3, kind: output, shape index: {}]  }
   0x1   :  { %v478_v0 = vld [vmem:[%s763_s1 + $0x18] sm:$0xff]   ;;  %477 = vset.pattern.permute.xlu1 %v518_v1  ;;  %476 = vset.pattern.permute.xlu0 %v518_v1  ;;  %v479_v2 = vld [vmem:[%s763_s1 + $0x10] sm:$0xff]   ;;  %v480_v3 = vld [vmem:[%s763_s1 + $0x8] sm:$0xff]  }
   0x2   :  { %450 = vmatprep.subr.bf16.mxu0 %v478_v0  ;;  %466 = vmatprep.subr.bf16.mxu1 %v478_v0  ;;  %v482_v4 = vld [vmem:[%s764_s0] sm:$0xff]   ;;  %v483_v5 = vld [vmem:[%s764_s0 + $0x10] sm:$0xff]   ;;  %v34_v9 = vld [vmem:[%s765_s2 + $0x18] sm:$0xff] }
   0x3   :  { %451 = vmatpush3.bf16.msra.mxu0 %v478_v0  ;;  %470 = vmatpush3.bf16.msra.mxu1 %v478_v0  ;;  %v481_v6 = vld [vmem:[%s763_s1] sm:$0xff]   ;;  %v33_v7 = vld [vmem:[%s765_s2 + $0x10] sm:$0xff]  ;;  %v32_v10 = vld [vmem:[%s765_s2 + $0x8] sm:$0xff] }
   0x4   :  { %452 = vmatprep.subr.bf16.mxu0 %v479_v2  ;;  %467 = vmatprep.subr.bf16.mxu1 %v479_v2  ;;  %v31_v8 = vld [vmem:[%s765_s2] sm:$0xff]  ;;  %v484_v11 = vld [vmem:[%s764_s0 + $0x8] sm:$0xff]   ;;  %v485_v12 = vld [vmem:[%s764_s0 + $0x18] sm:$0xff]  }
   0x5   :  { %458 = vmatprep.mubr.msk.bf16.mxu0 %vm123_vm0, %v482_v4  ;;  %462 = vmatprep.mubr.msk.bf16.mxu1 %vm123_vm0, %v483_v5  ;;  %v36_v13 = vld [vmem:[%s765_s2 + $0x28] sm:$0xff]  ;;  %v35_v14 = vld [vmem:[%s765_s2 + $0x20] sm:$0xff]  ;;  %v38_v15 = vld [vmem:[%s765_s2 + $0x38] sm:$0xff] }
   0x6   :  { %51 = vperm.xlu1 %477, %v33_v7   ;;  %41 = vperm.xlu0 %476, %v31_v8   ;;  %v37_v16 = vld [vmem:[%s765_s2 + $0x30] sm:$0xff] }
   0x7   :  { %453 = vmatpush3.bf16.msra.mxu0 %v479_v2  ;;  %471 = vmatpush3.bf16.msra.mxu1 %v479_v2 }
   0x8   :  { %454 = vmatprep.subr.bf16.mxu0 %v480_v3  ;;  %468 = vmatprep.subr.bf16.mxu1 %v480_v3 }
   0xa   :  { %56 = vperm.xlu1 %477, %v34_v9   ;;  %46 = vperm.xlu0 %476, %v32_v10  }
   0xb   :  { %455 = vmatpush3.bf16.msra.mxu0 %v480_v3  ;;  %472 = vmatpush3.bf16.msra.mxu1 %v480_v3 }
   0xc   :  { %456 = vmatprep.subr.bf16.mxu0 %v481_v6  ;;  %469 = vmatprep.subr.bf16.mxu1 %v481_v6 }
   0xe   :  { %66 = vperm.xlu1 %477, %v36_v13   ;;  %61 = vperm.xlu0 %476, %v35_v14  }
   0xf   :  { %457 = vmatpush3.bf16.msra.mxu0 %v481_v6  ;;  %473 = vmatpush3.bf16.msra.mxu1 %v481_v6 }
  0x12   :  { %459 = vmatmul.mubr.msk.bf16.vlgmr.msra.gmra.mxu0 %vm123_vm0, %v484_v11  ;;  %463 = vmatmul.mubr.msk.bf16.vlgmr.msra.gmra.mxu1 %vm123_vm0, %v485_v12 }
  0x13   :  { %76 = vperm.xlu1 %477, %v38_v15   ;;  %71 = vperm.xlu0 %476, %v37_v16  }
  0x81   :  { %v42_v17 = vpop.permute.xlu0 %41  ;;  %v52_v19 = vpop.permute.xlu1 %51 }
  0x85   :  { %v47_v18 = vpop.permute.xlu0 %46  ;;  %v57_v21 = vpop.permute.xlu1 %56 }
  0x89   :  { %v62_v20 = vpop.permute.xlu0 %61  ;;  %v67_v35 = vpop.permute.xlu1 %66 }
  0x8e   :  { %v72_v22 = vpop.permute.xlu0 %71  ;;  %v77_v47 = vpop.permute.xlu1 %76 }
  0xd2   :  { %v460_v23 = vpop.f32.mrf.mxu0  ;;  %v464_v24 = vpop.f32.mrf.mxu1 }
  0xd3   :  { %v179_v25 = vadd.f32 %v460_v23, %v52_v19  ;;  %v592_v26 = vadd.f32 %v464_v24, %v72_v22 }
  0xd4   :  { %v170_v27 = vpop.f32.mrf.mxu0  ;;  %v186_v28 = vpop.f32.mrf.mxu1 }
  0xd5   :  { %v211_v29 = vmul.f32 0.70710677, %v179_v25  ;;  %v595_v30 = vmul.f32 0.70710677, %v592_v26  ;;  %v597_v31 = vadd.f32 %v170_v27, %v42_v17  ;;  %v599_v32 = vadd.f32 %v186_v28, %v62_v20 }
  0xd6   :  { %v461_v37 = vpop.f32.mrf.mxu0  ;;  %v465_v45 = vpop.f32.mrf.mxu1  ;;  %v633_v12 = vmul.f32 0.5, %v179_v25  ;;  %v519_v17 = vmov -1.0   ;;  %v645_v20 = vmul.f32 0.5, %v592_v26 }
  0xd7   :  { %v235_v33 = vand.u32 2147483647, %v211_v29  ;;  %v239_v34 = vand.u32 2147483647, %v595_v30  ;;  %v603_v36 = vmul.f32 0.70710677, %v597_v31  ;;  %v610_v50 = vadd.f32 %v461_v37, %v57_v21 }
  0xd8   :  { %v607_v41 = vmul.f32 0.70710677, %v599_v32  ;;  %v173_v46 = vpop.f32.mrf.mxu0  ;;  %v612_v51 = vadd.f32 %v465_v45, %v77_v47  ;;  %v189_v61 = vpop.f32.mrf.mxu1  ;;  %vm219_vm1 = vcmp.ge.f32.partialorder %v211_v29, 0.0  ;;  %vm223_vm2 = vcmp.ge.f32.partialorder %v595_v30, 0.0 }
  0xd9   :  { %v243_v38 = vmul.f32 0.3275911, %v235_v33  ;;  %v247_v39 = vmul.f32 0.3275911, %v239_v34  ;;  %v233_v40 = vand.u32 2147483647, %v603_v36  ;;  %v614_v52 = vadd.f32 %v173_v46, %v47_v18 }
  0xda   :  { %v237_v49 = vand.u32 2147483647, %v607_v41  ;;  %v347_v54 = vsub.f32 0.0, %v235_v33  ;;  %v617_v55 = vmul.f32 0.70710677, %v610_v50  ;;  %v351_v58 = vsub.f32 0.0, %v239_v34 }
  0xdb   :  { %v251_v42 = vadd.f32 1.0, %v243_v38  ;;  %v255_v43 = vadd.f32 1.0, %v247_v39  ;;  %v241_v44 = vmul.f32 0.3275911, %v233_v40  ;;  %v620_v57 = vmul.f32 0.70710677, %v612_v51 }
  0xdc   :  { %v245_v53 = vmul.f32 0.3275911, %v237_v49  ;;  %v236_v59 = vand.u32 2147483647, %v617_v55  ;;  %v624_v60 = vmul.f32 0.70710677, %v614_v52  ;;  %v355_v63 = vmul.f32 %v347_v54, %v235_v33 }
  0xdd   :  { %486 = vrcp.f32 %v251_v42  ;;  %v249_v48 = vadd.f32 1.0, %v241_v44  ;;  %v345_v62 = vsub.f32 0.0, %v233_v40  ;;  %v240_v1 = vand.u32 2147483647, %v620_v57 }
  0xde   :  { %488 = vrcp.f32 %v255_v43  ;;  %v253_v56 = vadd.f32 1.0, %v245_v53  ;;  %v244_v0 = vmul.f32 0.3275911, %v236_v59  ;;  %v234_v2 = vand.u32 2147483647, %v624_v60 }
  0xdf   :  { %490 = vrcp.f32 %v249_v48  ;;  %v628_v3 = vadd.f32 %v189_v61, %v67_v35  ;;  %v359_v4 = vmul.f32 %v351_v58, %v239_v34  ;;  %v248_v6 = vmul.f32 0.3275911, %v240_v1 }
  0xe0   :  { %492 = vrcp.f32 %v253_v56  ;;  %v252_v5 = vadd.f32 1.0, %v244_v0  ;;  %v353_v7 = vmul.f32 %v345_v62, %v233_v40  ;;  %v242_v8 = vmul.f32 0.3275911, %v234_v2 }
  0xe1   :  { %v365_v9 = vmul.f32 1.442695, %v355_v63  ;;  %v256_v10 = vadd.f32 1.0, %v248_v6  ;;  %v349_v13 = vsub.f32 0.0, %v237_v49  ;;  %v636_v15 = vmul.f32 0.70710677, %v628_v3 }
  0xe2   :  { %494 = vrcp.f32 %v252_v5  ;;  %v250_v14 = vadd.f32 1.0, %v242_v8  ;;  %v641_v18 = vsel %vm219_vm1, 1.0, %v519_v17  ;;  %v373_v21 = vmul.f32 1.442695, %v359_v4 }
  0xe3   :  { %v648_v22 = vsel %vm223_vm2, 1.0, %v519_v17  ;;  %v361_v24 = vmul.f32 1.442695, %v353_v7  ;;  %496 = vrcp.f32 %v256_v10  ;;  %v348_v27 = vsub.f32 0.0, %v236_v59 }
  0xe4   :  { %498 = vpow2.f32 %v365_v9  ;;  %v238_v28 = vand.u32 2147483647, %v636_v15  ;;  %v357_v33 = vmul.f32 %v349_v13, %v237_v49  ;;  %v352_v34 = vsub.f32 0.0, %v240_v1 }
  0xe5   :  { %500 = vrcp.f32 %v250_v14  ;;  %v658_v39 = vmul.f32 0.5, %v597_v31  ;;  %v346_v40 = vsub.f32 0.0, %v234_v2  ;;  %v356_v45 = vmul.f32 %v348_v27, %v236_v59 }
  0xe6   :  { %502 = vpow2.f32 %v373_v21  ;;  %v246_v37 = vmul.f32 0.3275911, %v238_v28  ;;  %v369_v49 = vmul.f32 1.442695, %v357_v33  ;;  %v360_v53 = vmul.f32 %v352_v34, %v240_v1 }
  0xe7   :  { %504 = vpow2.f32 %v361_v24  ;;  %v350_v31 = vsub.f32 0.0, %v238_v28  ;;  %vm217_vm3 = vcmp.ge.f32.partialorder %v603_v36, 0.0  ;;  %v354_v62 = vmul.f32 %v346_v40, %v234_v2 }
  0xe8   :  { %v254_v46 = vadd.f32 1.0, %v246_v37  ;;  %v367_v0 = vmul.f32 1.442695, %v356_v45  ;;  %v375_v6 = vmul.f32 1.442695, %v360_v53  ;;  %v225_v2 = vsel %vm217_vm3, 1.0, %v519_v17 }
  0xe9   :  { %v358_v10 = vmul.f32 %v350_v31, %v238_v28  ;;  %vm221_vm5 = vcmp.ge.f32.partialorder %v607_v41, 0.0  ;;  %vm220_vm6 = vcmp.ge.f32.partialorder %v617_v55, 0.0  ;;  %vm224_vm7 = vcmp.ge.f32.partialorder %v620_v57, 0.0 }
  0xea   :  { %v631_v11 = vpop.eup %486  ;;  %506 = vrcp.f32 %v254_v46  ;;  %v228_v55 = vsel %vm220_vm6, 1.0, %v519_v17  ;;  %vm218_vm8 = vcmp.ge.f32.partialorder %v624_v60, 0.0  ;;  %v232_v57 = vsel %vm224_vm7, 1.0, %v519_v17 }
  0xeb   :  { %v638_v16 = vpop.eup %488  ;;  %v275_v19 = vmul.f32 1.0614054, %v631_v11  ;;  %508 = vpow2.f32 %v369_v49  ;;  %v371_v37 = vmul.f32 1.442695, %v358_v10  ;;  %vm222_vm9 = vcmp.ge.f32.partialorder %v636_v15, 0.0 }
  0xec   :  { %v279_v23 = vmul.f32 1.0614054, %v638_v16  ;;  %v652_v29 = vpop.eup %490  ;;  %510 = vpow2.f32 %v367_v0  ;;  %v206_v15 = vmul.f32 0.5, %v628_v3 }
  0xed   :  { %v283_v25 = vadd.f32 -1.4531521, %v275_v19  ;;  %v273_v35 = vmul.f32 1.0614054, %v652_v29  ;;  %v660_v42 = vpop.eup %492  ;;  %v363_v19 = vmul.f32 1.442695, %v354_v62  ;;  %512 = vpow2.f32 %v375_v6 }
  0xee   :  { %v287_v30 = vadd.f32 -1.4531521, %v279_v23  ;;  %v277_v48 = vmul.f32 1.0614054, %v660_v42 }
  0xef   :  { %v291_v26 = vmul.f32 %v631_v11, %v283_v25  ;;  %v281_v44 = vadd.f32 -1.4531521, %v273_v35  ;;  %v667_v4 = vpop.eup %494  ;;  %514 = vpow2.f32 %v363_v19 }
  0xf0   :  { %v295_v38 = vmul.f32 %v638_v16, %v287_v30  ;;  %v285_v61 = vadd.f32 -1.4531521, %v277_v48  ;;  %v276_v9 = vmul.f32 1.0614054, %v667_v4  ;;  %v677_v21 = vpop.eup %496  ;;  %516 = vpow2.f32 %v371_v37 }
  0xf1   :  { %v299_v43 = vadd.f32 1.4214138, %v291_v26  ;;  %v289_v56 = vmul.f32 %v652_v29, %v281_v44  ;;  %v499_v27 = vpop.eup %498  ;;  %v280_v28 = vmul.f32 1.0614054, %v677_v21 }
  0xf2   :  { %v303_v47 = vadd.f32 1.4214138, %v295_v38  ;;  %v293_v1 = vmul.f32 %v660_v42, %v285_v61  ;;  %v284_v25 = vadd.f32 -1.4531521, %v276_v9  ;;  %v681_v34 = vpop.eup %500 }
  0xf3   :  { %v307_v54 = vmul.f32 %v631_v11, %v299_v43  ;;  %v297_v59 = vadd.f32 1.4214138, %v289_v56  ;;  %v503_v38 = vpop.eup %502  ;;  %v288_v44 = vadd.f32 -1.4531521, %v280_v28  ;;  %v274_v45 = vmul.f32 1.0614054, %v681_v34 }
  0xf4   :  { %v311_v58 = vmul.f32 %v638_v16, %v303_v47  ;;  %v301_v14 = vadd.f32 1.4214138, %v293_v1  ;;  %v292_v35 = vmul.f32 %v667_v4, %v284_v25  ;;  %v505_v46 = vpop.eup %504 }
  0xf5   :  { %v315_v63 = vadd.f32 -0.28449672, %v307_v54  ;;  %v305_v8 = vmul.f32 %v652_v29, %v297_v59  ;;  %v296_v54 = vmul.f32 %v677_v21, %v288_v44  ;;  %v282_v56 = vadd.f32 -1.4531521, %v274_v45 }
  0xf6   :  { %v319_v5 = vadd.f32 -0.28449672, %v311_v58  ;;  %v309_v33 = vmul.f32 %v660_v42, %v301_v14  ;;  %v300_v49 = vadd.f32 1.4214138, %v292_v35 }
  0xf7   :  { %v323_v7 = vmul.f32 %v631_v11, %v315_v63  ;;  %v313_v24 = vadd.f32 -0.28449672, %v305_v8  ;;  %v693_v61 = vpop.eup %506  ;;  %v304_v59 = vadd.f32 1.4214138, %v296_v54  ;;  %v290_v0 = vmul.f32 %v681_v34, %v282_v56 }
  0xf8   :  { %v327_v13 = vmul.f32 %v638_v16, %v319_v5  ;;  %v317_v43 = vadd.f32 -0.28449672, %v309_v33  ;;  %v308_v58 = vmul.f32 %v667_v4, %v300_v49 }
  0xf9   :  { %v331_v23 = vadd.f32 0.2548296, %v323_v7  ;;  %v321_v26 = vmul.f32 %v652_v29, %v313_v24  ;;  %v278_v7 = vmul.f32 1.0614054, %v693_v61  ;;  %v312_v9 = vmul.f32 %v677_v21, %v304_v59 }
  0xfa   :  { %v335_v30 = vadd.f32 0.2548296, %v327_v13  ;;  %v325_v53 = vmul.f32 %v660_v42, %v317_v43  ;;  %v316_v6 = vadd.f32 -0.28449672, %v308_v58  ;;  %v298_v10 = vadd.f32 1.4214138, %v290_v0  ;;  %v509_v13 = vpop.eup %508 }
  0xfb   :  { %v339_v36 = vmul.f32 %v631_v11, %v331_v23  ;;  %v329_v48 = vadd.f32 0.2548296, %v321_v26  ;;  %v286_v24 = vadd.f32 -1.4531521, %v278_v7  ;;  %v204_v0 = vmul.f32 0.5, %v610_v50 }
  0xfc   :  { %v343_v40 = vmul.f32 %v638_v16, %v335_v30  ;;  %v333_v63 = vadd.f32 0.2548296, %v325_v53  ;;  %v324_v23 = vmul.f32 %v667_v4, %v316_v6  ;;  %v306_v30 = vmul.f32 %v681_v34, %v298_v10 }
  0xfd   :  { %v379_v47 = vmul.f32 %v499_v27, %v339_v36  ;;  %v337_v16 = vmul.f32 %v652_v29, %v329_v48  ;;  %v511_v36 = vpop.eup %510 }
  0xfe   :  { %v383_v11 = vmul.f32 %v503_v38, %v343_v40  ;;  %v341_v29 = vmul.f32 %v660_v42, %v333_v63  ;;  %v294_v42 = vmul.f32 %v693_v61, %v286_v24  ;;  %v314_v38 = vadd.f32 -0.28449672, %v306_v30  ;;  %v513_v40 = vpop.eup %512 }
  0xff   :  { %v387_v31 = vsub.f32 1.0, %v379_v47  ;;  %v377_v1 = vmul.f32 %v505_v46, %v337_v16  ;;  %v515_v49 = vpop.eup %514 }
 0x100   :  { %v391_v62 = vsub.f32 1.0, %v383_v11  ;;  %v381_v27 = vmul.f32 %v509_v13, %v341_v29  ;;  %v302_v44 = vadd.f32 1.4214138, %v294_v42  ;;  %v322_v46 = vmul.f32 %v681_v34, %v314_v38 }
 0x101   :  { %v395_v5 = vmul.f32 %v387_v31, %v641_v18  ;;  %v385_v19 = vsub.f32 1.0, %v377_v1  ;;  %v320_v18 = vadd.f32 -0.28449672, %v312_v9  ;;  %v208_v9 = vmul.f32 0.5, %v612_v51 }
 0x102   :  { %v399_v8 = vmul.f32 %v391_v62, %v648_v22  ;;  %v332_v22 = vadd.f32 0.2548296, %v324_v23  ;;  %v389_v35 = vsub.f32 1.0, %v381_v27  ;;  %v310_v41 = vmul.f32 %v693_v61, %v302_v44 }
 0x103   :  { %v403_v14 = vadd.f32 1.0, %v395_v5  ;;  %v393_v28 = vmul.f32 %v385_v19, %v225_v2  ;;  %v328_v37 = vmul.f32 %v677_v21, %v320_v18  ;;  %v330_v54 = vadd.f32 0.2548296, %v322_v46 }
 0x104   :  { %v407_v25 = vadd.f32 1.0, %v399_v8  ;;  %v340_v2 = vmul.f32 %v667_v4, %v332_v22  ;;  %v205_v4 = vmul.f32 0.5, %v599_v32  ;;  %v318_v31 = vadd.f32 -0.28449672, %v310_v41 }
 0x105   :  { %v411_v33 = vmul.f32 %v403_v14, %v633_v12  ;;  %v401_v43 = vadd.f32 1.0, %v393_v28  ;;  %v229_v12 = vsel %vm221_vm5, 1.0, %v519_v17  ;;  %v336_v45 = vadd.f32 0.2548296, %v328_v37 }
 0x106   :  { %v415_v26 = vmul.f32 %v407_v25, %v645_v20  ;;  %v397_v20 = vmul.f32 %v389_v35, %v229_v12  ;;  %v380_v48 = vmul.f32 %v511_v36, %v340_v2  ;;  %v338_v32 = vmul.f32 %v681_v34, %v330_v54 }
 0x107   :  { %420 = vst.msk [vmem:[%s766_s3 + $0x10] sm:$0xff] %vm417_vm4, %v411_v33  ;;  %v409_v47 = vmul.f32 %v401_v43, %v658_v39  ;;  %v344_v53 = vmul.f32 %v677_v21, %v336_v45  ;;  %v517_v39 = vpop.eup %516  ;;  %v326_v21 = vmul.f32 %v693_v61, %v318_v31  ;;  %v226_v8 = vsel %vm218_vm8, 1.0, %v519_v17 }
 0x108   :  { %424 = vst.msk [vmem:[%s766_s3 + $0x30] sm:$0xff] %vm417_vm4, %v415_v26  ;;  %v405_v11 = vadd.f32 1.0, %v397_v20  ;;  %v388_v56 = vsub.f32 1.0, %v380_v48  ;;  %v378_v59 = vmul.f32 %v515_v49, %v338_v32  ;;  %v202_v14 = vmul.f32 0.5, %v614_v52 }
 0x109   :  { %418 = vst.msk [vmem:[%s766_s3] sm:$0xff] %vm417_vm4, %v409_v47  ;;  %v384_v58 = vmul.f32 %v513_v40, %v344_v53  ;;  %v334_v1 = vadd.f32 0.2548296, %v326_v21 }
 0x10a   :  { %v413_v16 = vmul.f32 %v405_v11, %v205_v4  ;;  %v396_v62 = vmul.f32 %v388_v56, %v228_v55  ;;  %v386_v34 = vsub.f32 1.0, %v378_v59 }
 0x10b   :  { %v392_v63 = vsub.f32 1.0, %v384_v58  ;;  %v342_v29 = vmul.f32 %v693_v61, %v334_v1  ;;  %v230_v61 = vsel %vm222_vm9, 1.0, %v519_v17 }
 0x10c   :  { %422 = vst.msk [vmem:[%s766_s3 + $0x20] sm:$0xff] %vm417_vm4, %v413_v16  ;;  %v404_v5 = vadd.f32 1.0, %v396_v62  ;;  %v394_v13 = vmul.f32 %v386_v34, %v226_v8 }
 0x10d   :  { %v400_v6 = vmul.f32 %v392_v63, %v232_v57  ;;  %v382_v50 = vmul.f32 %v517_v39, %v342_v29 }
 0x10e   :  { %v412_v7 = vmul.f32 %v404_v5, %v204_v0  ;;  %v402_v19 = vadd.f32 1.0, %v394_v13 }
 0x10f   :  { %v408_v10 = vadd.f32 1.0, %v400_v6  ;;  %v390_v23 = vsub.f32 1.0, %v382_v50 }
 0x110   :  { %421 = vst.msk [vmem:[%s766_s3 + $0x18] sm:$0xff] %vm417_vm4, %v412_v7  ;;  %v410_v51 = vmul.f32 %v402_v19, %v202_v14 }
 0x111   :  { %v416_v60 = vmul.f32 %v408_v10, %v208_v9  ;;  %v398_v24 = vmul.f32 %v390_v23, %v230_v61 }
 0x112   :  { %419 = vst.msk [vmem:[%s766_s3 + $0x8] sm:$0xff] %vm417_vm4, %v410_v51 }
 0x113   :  { %425 = vst.msk [vmem:[%s766_s3 + $0x38] sm:$0xff] %vm417_vm4, %v416_v60  ;;  %v406_v25 = vadd.f32 1.0, %v398_v24 }
 0x115   :  { %v414_v52 = vmul.f32 %v406_v25, %v206_v15 }
 0x117   :  { %423 = vst.msk [vmem:[%s766_s3 + $0x28] sm:$0xff] %vm417_vm4, %v414_v52 }

// kernel: cnn_decoder_forward.8
= control target key start
LH: loop header
LB: loop body
LE: loop exit
PB: predicated region body
PF: predicated region fallthrough
CT: control target
= control target key end

     0   :  { %v251_v0 = vmov 0   ;;  %vm110_vm0 = vcmask 130048   ;;  %v252_v60 = vmov -1.0   ;;  %vm209_vm3 = vcmask 801792   ;;  %s318_s1 = inlined_call_operand.vmem [shape: bf16[144,98], index: 1, kind: input, shape index: {}]   ;;  %s319_s0 = inlined_call_operand.vmem [shape: bf16[16,144], index: 0, kind: input, shape index: {}]   ;;  %s320_s2 = inlined_call_operand.vmem [shape: f32[16,1], index: 2, kind: input, shape index: {}]   ;;  %s321_s3 = inlined_call_operand.vmem [shape: f32[16,98], index: 3, kind: output, shape index: {}]  }
   0x1   :  { %114 = vmatprep.subr.bf16.mxu0 %v251_v0  ;;  %v231_v1 = vld [vmem:[%s318_s1 + $0x38] sm:$0xff]   ;;  %230 = vset.pattern.permute.xlu0 %v251_v0  ;;  %v232_v2 = vld [vmem:[%s318_s1 + $0x30] sm:$0xff]   ;;  %v233_v3 = vld [vmem:[%s318_s1 + $0x28] sm:$0xff]  }
   0x2   :  { %115 = vmatpush1.bf16.msra.mxu0 %v231_v1  ;;  %v234_v4 = vld [vmem:[%s318_s1 + $0x20] sm:$0xff]   ;;  %v36_v7 = vld [vmem:[%s320_s2 + $0x8] sm:$0xff]  ;;  %v235_v8 = vld [vmem:[%s318_s1 + $0x18] sm:$0xff]  }
   0x3   :  { %116 = vmatprep.subr.bf16.mxu0 %v251_v0  ;;  %v242_v5 = vld [vmem:[%s319_s0 + $0x4] ss:$8 sps:$4 sm:$0xff]   ;;  %v236_v9 = vld [vmem:[%s318_s1 + $0x10] sm:$0xff]   ;;  %v240_v13 = vld [vmem:[%s319_s0] ss:$8 sps:$4 sm:$0xff]  }
   0x4   :  { %v35_v6 = vld [vmem:[%s320_s2] sm:$0xff]  ;;  %227 = vmatprep.mubr.msk.bf16.mxu0 %vm110_vm0, %v242_v5  ;;  %v237_v10 = vld [vmem:[%s318_s1 + $0x8] sm:$0xff]  }
   0x5   :  { %39 = vperm.xlu0 %230, %v35_v6   ;;  %v238_v11 = vld [vmem:[%s318_s1] sm:$0xff]  }
   0x6   :  { %117 = vmatpush1.bf16.msra.mxu0 %v232_v2  ;;  %v239_v12 = vld [vmem:[%s318_s1 + $0x40] sm:$0xff]  }
   0x7   :  { %118 = vmatprep.subr.bf16.mxu0 %v251_v0 }
   0x9   :  { %44 = vperm.xlu0 %230, %v36_v7  }
   0xa   :  { %119 = vmatpush1.bf16.msra.mxu0 %v233_v3 }
   0xb   :  { %120 = vmatprep.subr.bf16.mxu0 %v251_v0 }
   0xe   :  { %121 = vmatpush1.bf16.msra.mxu0 %v234_v4 }
   0xf   :  { %122 = vmatprep.subr.bf16.mxu0 %v251_v0 }
  0x12   :  { %123 = vmatpush1.bf16.msra.mxu0 %v235_v8 }
  0x13   :  { %124 = vmatprep.subr.bf16.mxu0 %v251_v0 }
  0x16   :  { %125 = vmatpush1.bf16.msra.mxu0 %v236_v9 }
  0x17   :  { %126 = vmatprep.subr.bf16.mxu0 %v251_v0 }
  0x1a   :  { %127 = vmatpush1.bf16.msra.mxu0 %v237_v10 }
  0x1b   :  { %128 = vmatprep.subr.bf16.mxu0 %v251_v0 }
  0x1e   :  { %129 = vmatpush1.bf16.msra.mxu0 %v238_v11 }
  0x1f   :  { %144 = vmatprep.subr.bf16.mxu0 %v251_v0 }
  0x22   :  { %145 = vmatpush2.bf16.msra.mxu0 %v239_v12 }
  0x25   :  { %147 = vmatmul.mubr.bf16.vlgmr.msra.gmra.mxu0 %v240_v13 }
  0x80   :  { %v40_v14 = vpop.permute.xlu0 %39 }
  0x84   :  { %v45_v19 = vpop.permute.xlu0 %44 }
  0xe5   :  { %v148_v15 = vpop.f32.mrf.mxu0 }
  0xe6   :  { %v149_v16 = vadd.f32 %v148_v15, %v40_v14 }
  0xe7   :  { %v150_v17 = vpop.f32.mrf.mxu0 }
  0xe8   :  { %v157_v18 = vmul.f32 0.70710677, %v149_v16  ;;  %v155_v0 = vmul.f32 0.5, %v149_v16 }
  0xe9   :  { %v151_v20 = vpop.f32.mrf.mxu0 }
  0xea   :  { %v163_v21 = vand.u32 2147483647, %v157_v18  ;;  %v152_v22 = vadd.f32 %v151_v20, %v45_v19  ;;  %vm159_vm1 = vcmp.ge.f32.partialorder %v157_v18, 0.0 }
  0xeb   :  { %v153_v23 = vpop.f32.mrf.mxu0  ;;  %v161_v61 = vsel %vm159_vm1, 1.0, %v252_v60 }
  0xec   :  { %v165_v24 = vmul.f32 0.3275911, %v163_v21  ;;  %v158_v25 = vmul.f32 0.70710677, %v152_v22  ;;  %v191_v30 = vsub.f32 0.0, %v163_v21  ;;  %v156_v6 = vmul.f32 0.5, %v152_v22 }
  0xee   :  { %v167_v26 = vadd.f32 1.0, %v165_v24  ;;  %v164_v27 = vand.u32 2147483647, %v158_v25  ;;  %v193_v31 = vmul.f32 %v191_v30, %v163_v21  ;;  %vm160_vm2 = vcmp.ge.f32.partialorder %v158_v25, 0.0 }
  0xef   :  { %v162_v3 = vsel %vm160_vm2, 1.0, %v252_v60 }
  0xf0   :  { %243 = vrcp.f32 %v167_v26  ;;  %v166_v28 = vmul.f32 0.3275911, %v164_v27  ;;  %v192_v32 = vsub.f32 0.0, %v164_v27  ;;  %v195_v35 = vmul.f32 1.442695, %v193_v31 }
  0xf2   :  { %v168_v29 = vadd.f32 1.0, %v166_v28  ;;  %v194_v36 = vmul.f32 %v192_v32, %v164_v27 }
  0xf4   :  { %245 = vrcp.f32 %v168_v29  ;;  %v197_v41 = vmul.f32 1.442695, %v194_v36 }
  0xf5   :  { %247 = vpow2.f32 %v195_v35 }
  0xf6   :  { %249 = vpow2.f32 %v197_v41 }
  0xfd   :  { %v244_v33 = vpop.eup %243 }
  0xfe   :  { %v173_v34 = vmul.f32 1.0614054, %v244_v33 }
 0x100   :  { %v175_v37 = vadd.f32 -1.4531521, %v173_v34 }
 0x101   :  { %v246_v38 = vpop.eup %245 }
 0x102   :  { %v177_v39 = vmul.f32 %v244_v33, %v175_v37  ;;  %v174_v40 = vmul.f32 1.0614054, %v246_v38  ;;  %v248_v54 = vpop.eup %247 }
 0x103   :  { %v250_v59 = vpop.eup %249 }
 0x104   :  { %v179_v42 = vadd.f32 1.4214138, %v177_v39  ;;  %v176_v43 = vadd.f32 -1.4531521, %v174_v40 }
 0x106   :  { %v181_v44 = vmul.f32 %v244_v33, %v179_v42  ;;  %v178_v45 = vmul.f32 %v246_v38, %v176_v43 }
 0x108   :  { %v183_v46 = vadd.f32 -0.28449672, %v181_v44  ;;  %v180_v47 = vadd.f32 1.4214138, %v178_v45 }
 0x10a   :  { %v185_v48 = vmul.f32 %v244_v33, %v183_v46  ;;  %v182_v49 = vmul.f32 %v246_v38, %v180_v47 }
 0x10c   :  { %v187_v50 = vadd.f32 0.2548296, %v185_v48  ;;  %v184_v51 = vadd.f32 -0.28449672, %v182_v49 }
 0x10e   :  { %v189_v52 = vmul.f32 %v244_v33, %v187_v50  ;;  %v186_v53 = vmul.f32 %v246_v38, %v184_v51 }
 0x110   :  { %v199_v55 = vmul.f32 %v248_v54, %v189_v52  ;;  %v188_v56 = vadd.f32 0.2548296, %v186_v53 }
 0x112   :  { %v201_v57 = vsub.f32 1.0, %v199_v55  ;;  %v190_v58 = vmul.f32 %v246_v38, %v188_v56 }
 0x114   :  { %v203_v62 = vmul.f32 %v201_v57, %v161_v61  ;;  %v200_v63 = vmul.f32 %v250_v59, %v190_v58 }
 0x116   :  { %v205_v1 = vadd.f32 1.0, %v203_v62  ;;  %v202_v2 = vsub.f32 1.0, %v200_v63 }
 0x118   :  { %v207_v4 = vmul.f32 %v205_v1, %v155_v0  ;;  %v204_v5 = vmul.f32 %v202_v2, %v162_v3 }
 0x11a   :  { %210 = vst.msk [vmem:[%s321_s3] sm:$0xff] %vm209_vm3, %v207_v4  ;;  %v206_v7 = vadd.f32 1.0, %v204_v5 }
 0x11c   :  { %v208_v8 = vmul.f32 %v206_v7, %v156_v6 }
 0x11e   :  { %211 = vst.msk [vmem:[%s321_s3 + $0x8] sm:$0xff] %vm209_vm3, %v208_v8 }

// kernel: cnn_decoder_forward.9
= control target key start
LH: loop header
LB: loop body
LE: loop exit
PB: predicated region body
PF: predicated region fallthrough
CT: control target
= control target key end

     0   :  { %v310_v1 = vmov 0   ;;  %vm85_vm0 = vcmask 523264   ;;  %vm249_vm4 = vcmask 801792   ;;  %s412_s1 = inlined_call_operand.vmem [shape: bf16[64,98], index: 1, kind: input, shape index: {}]   ;;  %s413_s0 = inlined_call_operand.vmem [shape: bf16[32,64], index: 0, kind: input, shape index: {}]   ;;  %s414_s2 = inlined_call_operand.vmem [shape: f32[32,1], index: 2, kind: input, shape index: {}]   ;;  %s415_s3 = inlined_call_operand.vmem [shape: f32[32,98], index: 3, kind: output, shape index: {}]  }
   0x1   :  { %v288_v0 = vld [vmem:[%s412_s1 + $0x18] sm:$0xff]   ;;  %287 = vset.pattern.permute.xlu1 %v310_v1  ;;  %286 = vset.pattern.permute.xlu0 %v310_v1  ;;  %v289_v2 = vld [vmem:[%s412_s1 + $0x10] sm:$0xff]   ;;  %v290_v3 = vld [vmem:[%s412_s1 + $0x8] sm:$0xff]  }
   0x2   :  { %272 = vmatprep.subr.bf16.mxu0 %v288_v0  ;;  %v292_v4 = vld [vmem:[%s413_s0] sm:$0xff]   ;;  %v29_v5 = vld [vmem:[%s414_s2 + $0x10] sm:$0xff]  ;;  %v30_v8 = vld [vmem:[%s414_s2 + $0x18] sm:$0xff] }
   0x3   :  { %273 = vmatpush3.bf16.msra.mxu0 %v288_v0  ;;  %280 = vmatprep.mubr.msk.bf16.mxu0 %vm85_vm0, %v292_v4  ;;  %v27_v6 = vld [vmem:[%s414_s2] sm:$0xff]  ;;  %v28_v9 = vld [vmem:[%s414_s2 + $0x8] sm:$0xff] }
   0x4   :  { %274 = vmatprep.subr.bf16.mxu0 %v289_v2  ;;  %43 = vperm.xlu1 %287, %v29_v5   ;;  %v291_v7 = vld [vmem:[%s412_s1] sm:$0xff]   ;;  %v293_v10 = vld [vmem:[%s413_s0 + $0x8] sm:$0xff]  }
   0x5   :  { %33 = vperm.xlu0 %286, %v27_v6  }
   0x7   :  { %275 = vmatpush3.bf16.msra.mxu0 %v289_v2 }
   0x8   :  { %276 = vmatprep.subr.bf16.mxu0 %v290_v3  ;;  %48 = vperm.xlu1 %287, %v30_v8  }
   0x9   :  { %38 = vperm.xlu0 %286, %v28_v9  }
   0xb   :  { %277 = vmatpush3.bf16.msra.mxu0 %v290_v3 }
   0xc   :  { %278 = vmatprep.subr.bf16.mxu0 %v291_v7 }
   0xf   :  { %279 = vmatpush3.bf16.msra.mxu0 %v291_v7 }
  0x12   :  { %281 = vmatmul.mubr.msk.bf16.vlgmr.msra.gmra.mxu0 %vm85_vm0, %v293_v10 }
  0x7f   :  { %v44_v11 = vpop.permute.xlu1 %43 }
  0x80   :  { %v34_v13 = vpop.permute.xlu0 %33 }
  0x83   :  { %v49_v20 = vpop.permute.xlu1 %48 }
  0x84   :  { %v39_v25 = vpop.permute.xlu0 %38 }
  0xd2   :  { %v282_v12 = vpop.f32.mrf.mxu0 }
  0xd3   :  { %v364_v14 = vadd.f32 %v282_v12, %v44_v11 }
  0xd4   :  { %v126_v15 = vpop.f32.mrf.mxu0 }
  0xd5   :  { %v367_v16 = vmul.f32 0.70710677, %v364_v14  ;;  %v369_v17 = vadd.f32 %v126_v15, %v34_v13 }
  0xd6   :  { %v283_v18 = vpop.f32.mrf.mxu0 }
  0xd7   :  { %v159_v19 = vand.u32 2147483647, %v367_v16  ;;  %v373_v21 = vmul.f32 0.70710677, %v369_v17  ;;  %v375_v22 = vadd.f32 %v283_v18, %v49_v20  ;;  %vm151_vm1 = vcmp.ge.f32.partialorder %v367_v16, 0.0 }
  0xd8   :  { %v129_v23 = vpop.f32.mrf.mxu0 }
  0xd9   :  { %v163_v24 = vmul.f32 0.3275911, %v159_v19  ;;  %v157_v26 = vand.u32 2147483647, %v373_v21  ;;  %v379_v27 = vmul.f32 0.70710677, %v375_v22  ;;  %v381_v28 = vadd.f32 %v129_v23, %v39_v25 }
  0xda   :  { %v215_v38 = vsub.f32 0.0, %v159_v19  ;;  %vm149_vm2 = vcmp.ge.f32.partialorder %v373_v21, 0.0 }
  0xdb   :  { %v167_v29 = vadd.f32 1.0, %v163_v24  ;;  %v161_v30 = vmul.f32 0.3275911, %v157_v26  ;;  %v160_v31 = vand.u32 2147483647, %v379_v27  ;;  %v213_v40 = vsub.f32 0.0, %v157_v26 }
  0xdc   :  { %v385_v32 = vmul.f32 0.70710677, %v381_v28  ;;  %v219_v41 = vmul.f32 %v215_v38, %v159_v19  ;;  %vm152_vm3 = vcmp.ge.f32.partialorder %v379_v27, 0.0 }
  0xdd   :  { %294 = vrcp.f32 %v167_v29  ;;  %v165_v33 = vadd.f32 1.0, %v161_v30  ;;  %v164_v34 = vmul.f32 0.3275911, %v160_v31  ;;  %v216_v42 = vsub.f32 0.0, %v160_v31 }
  0xde   :  { %v158_v35 = vand.u32 2147483647, %v385_v32  ;;  %v217_v44 = vmul.f32 %v213_v40, %v157_v26  ;;  %v225_v46 = vmul.f32 1.442695, %v219_v41  ;;  %vm150_vm5 = vcmp.ge.f32.partialorder %v385_v32, 0.0 }
  0xdf   :  { %296 = vrcp.f32 %v165_v33  ;;  %v168_v36 = vadd.f32 1.0, %v164_v34  ;;  %v220_v48 = vmul.f32 %v216_v42, %v160_v31  ;;  %v142_v32 = vmul.f32 0.5, %v381_v28 }
  0xe0   :  { %v162_v37 = vmul.f32 0.3275911, %v158_v35  ;;  %v214_v47 = vsub.f32 0.0, %v158_v35  ;;  %v221_v52 = vmul.f32 1.442695, %v217_v44  ;;  %v143_v44 = vmul.f32 0.5, %v364_v14 }
  0xe1   :  { %298 = vrcp.f32 %v168_v36  ;;  %v227_v58 = vmul.f32 1.442695, %v220_v48  ;;  %v311_v36 = vmov -1.0  }
  0xe2   :  { %v166_v39 = vadd.f32 1.0, %v162_v37  ;;  %v218_v55 = vmul.f32 %v214_v47, %v158_v35  ;;  %v155_v37 = vsel %vm151_vm1, 1.0, %v311_v36  ;;  %v156_v21 = vsel %vm152_vm3, 1.0, %v311_v36 }
  0xe4   :  { %300 = vrcp.f32 %v166_v39  ;;  %v223_v1 = vmul.f32 1.442695, %v218_v55 }
  0xe5   :  { %302 = vpow2.f32 %v225_v46  ;;  %v153_v46 = vsel %vm149_vm2, 1.0, %v311_v36 }
  0xe6   :  { %304 = vpow2.f32 %v221_v52 }
  0xe7   :  { %306 = vpow2.f32 %v227_v58  ;;  %v154_v58 = vsel %vm150_vm5, 1.0, %v311_v36 }
  0xe8   :  { %308 = vpow2.f32 %v223_v1 }
  0xea   :  { %v295_v43 = vpop.eup %294 }
  0xeb   :  { %v179_v45 = vmul.f32 1.0614054, %v295_v43 }
  0xec   :  { %v297_v49 = vpop.eup %296 }
  0xed   :  { %v183_v50 = vadd.f32 -1.4531521, %v179_v45  ;;  %v177_v51 = vmul.f32 1.0614054, %v297_v49 }
  0xee   :  { %v299_v53 = vpop.eup %298 }
  0xef   :  { %v187_v54 = vmul.f32 %v295_v43, %v183_v50  ;;  %v181_v56 = vadd.f32 -1.4531521, %v177_v51  ;;  %v180_v57 = vmul.f32 1.0614054, %v299_v53 }
  0xf1   :  { %v191_v59 = vadd.f32 1.4214138, %v187_v54  ;;  %v301_v60 = vpop.eup %300  ;;  %v185_v61 = vmul.f32 %v297_v49, %v181_v56  ;;  %v184_v62 = vadd.f32 -1.4531521, %v180_v57  ;;  %v144_v56 = vmul.f32 0.5, %v375_v22 }
  0xf2   :  { %v178_v0 = vmul.f32 1.0614054, %v301_v60  ;;  %v303_v23 = vpop.eup %302 }
  0xf3   :  { %v195_v63 = vmul.f32 %v295_v43, %v191_v59  ;;  %v189_v2 = vadd.f32 1.4214138, %v185_v61  ;;  %v188_v3 = vmul.f32 %v299_v53, %v184_v62  ;;  %v305_v33 = vpop.eup %304 }
  0xf4   :  { %v182_v5 = vadd.f32 -1.4531521, %v178_v0  ;;  %v307_v40 = vpop.eup %306 }
  0xf5   :  { %v199_v4 = vadd.f32 -0.28449672, %v195_v63  ;;  %v193_v6 = vmul.f32 %v297_v49, %v189_v2  ;;  %v192_v7 = vadd.f32 1.4214138, %v188_v3  ;;  %v309_v48 = vpop.eup %308 }
  0xf6   :  { %v186_v9 = vmul.f32 %v301_v60, %v182_v5 }
  0xf7   :  { %v203_v8 = vmul.f32 %v295_v43, %v199_v4  ;;  %v197_v10 = vadd.f32 -0.28449672, %v193_v6  ;;  %v196_v11 = vmul.f32 %v299_v53, %v192_v7 }
  0xf8   :  { %v190_v13 = vadd.f32 1.4214138, %v186_v9 }
  0xf9   :  { %v207_v12 = vadd.f32 0.2548296, %v203_v8  ;;  %v201_v15 = vmul.f32 %v297_v49, %v197_v10  ;;  %v200_v18 = vadd.f32 -0.28449672, %v196_v11 }
  0xfa   :  { %v194_v20 = vmul.f32 %v301_v60, %v190_v13 }
  0xfb   :  { %v211_v19 = vmul.f32 %v295_v43, %v207_v12  ;;  %v205_v24 = vadd.f32 0.2548296, %v201_v15  ;;  %v204_v25 = vmul.f32 %v299_v53, %v200_v18 }
  0xfc   :  { %v198_v29 = vadd.f32 -0.28449672, %v194_v20 }
  0xfd   :  { %v231_v26 = vmul.f32 %v303_v23, %v211_v19  ;;  %v209_v30 = vmul.f32 %v297_v49, %v205_v24  ;;  %v208_v31 = vadd.f32 0.2548296, %v204_v25 }
  0xfe   :  { %v202_v35 = vmul.f32 %v301_v60, %v198_v29 }
  0xff   :  { %v235_v34 = vsub.f32 1.0, %v231_v26  ;;  %v229_v38 = vmul.f32 %v305_v33, %v209_v30  ;;  %v212_v39 = vmul.f32 %v299_v53, %v208_v31  ;;  %v141_v53 = vmul.f32 0.5, %v369_v17 }
 0x100   :  { %v206_v42 = vadd.f32 0.2548296, %v202_v35 }
 0x101   :  { %v239_v41 = vmul.f32 %v235_v34, %v155_v37  ;;  %v233_v43 = vsub.f32 1.0, %v229_v38  ;;  %v232_v16 = vmul.f32 %v307_v40, %v212_v39 }
 0x102   :  { %v210_v47 = vmul.f32 %v301_v60, %v206_v42 }
 0x103   :  { %v243_v45 = vadd.f32 1.0, %v239_v41  ;;  %v237_v49 = vmul.f32 %v233_v43, %v153_v46  ;;  %v236_v50 = vsub.f32 1.0, %v232_v16 }
 0x104   :  { %v230_v52 = vmul.f32 %v309_v48, %v210_v47 }
 0x105   :  { %v247_v51 = vmul.f32 %v243_v45, %v143_v44  ;;  %v241_v54 = vadd.f32 1.0, %v237_v49  ;;  %v240_v55 = vmul.f32 %v236_v50, %v156_v21 }
 0x106   :  { %v234_v14 = vsub.f32 1.0, %v230_v52 }
 0x107   :  { %252 = vst.msk [vmem:[%s415_s3 + $0x10] sm:$0xff] %vm249_vm4, %v247_v51  ;;  %v245_v27 = vmul.f32 %v241_v54, %v141_v53  ;;  %v244_v57 = vadd.f32 1.0, %v240_v55 }
 0x108   :  { %v238_v59 = vmul.f32 %v234_v14, %v154_v58 }
 0x109   :  { %250 = vst.msk [vmem:[%s415_s3] sm:$0xff] %vm249_vm4, %v245_v27  ;;  %v248_v17 = vmul.f32 %v244_v57, %v144_v56 }
 0x10a   :  { %v242_v60 = vadd.f32 1.0, %v238_v59 }
 0x10b   :  { %253 = vst.msk [vmem:[%s415_s3 + $0x18] sm:$0xff] %vm249_vm4, %v248_v17 }
 0x10c   :  { %v246_v61 = vmul.f32 %v242_v60, %v142_v32 }
 0x10e   :  { %251 = vst.msk [vmem:[%s415_s3 + $0x8] sm:$0xff] %vm249_vm4, %v246_v61 }

// kernel: cnn_decoder_forward.10
= control target key start
LH: loop header
LB: loop body
LE: loop exit
PB: predicated region body
PF: predicated region fallthrough
CT: control target
= control target key end

     0   :  { %vm134_vm0 = vcmask 1043456   ;;  %v417_v2 = vmov 0   ;;  %vm130_vm1 = vcmask 588800   ;;  %vm340_vm6 = vcmask 64512   ;;  %s543_s1 = inlined_call_operand.vmem [shape: bf16[72,392], index: 1, kind: input, shape index: {}]   ;;  %s544_s2 = inlined_call_operand.vmem [shape: f32[8,1], index: 2, kind: input, shape index: {}]   ;;  %s545_s0 = inlined_call_operand.vmem [shape: bf16[8,72], index: 0, kind: input, shape index: {}]   ;;  %s546_s3 = inlined_call_operand.vmem [shape: f32[8,392], index: 3, kind: output, shape index: {}]  }
   0x1   :  { %v32_v0 = vld [vmem:[%s543_s1 + $0x80] sm:$0xff]  ;;  %v33_v1 = vld [vmem:[%s543_s1 + $0x88] sm:$0xff]  ;;  %179 = vmatprep.mubr.bf16.mxu0 %v417_v2  ;;  %220 = vmatprep.mubr.bf16.mxu1 %v417_v2 }
   0x2   :  { %v363_v3 = vcombine.high %v32_v0, %v32_v0  ;;  %v365_v4 = vcombine.high %v33_v1, %v33_v1  ;;  %v362_v5 = vcombine.low %v32_v0, %v32_v0  ;;  %v364_v6 = vcombine.low %v33_v1, %v33_v1  ;;  %v377_v7 = vld [vmem:[%s543_s1 + $0x64] ss:$16 sps:$4 sm:$0xff]   ;;  %372 = vset.pattern.permute.xlu0 %v417_v2  ;;  %v379_v8 = vld [vmem:[%s543_s1 + $0x6c] ss:$16 sps:$4 sm:$0xff]   ;;  %v381_v11 = vld [vmem:[%s543_s1 + $0x60] ss:$16 sps:$4 sm:$0xff]  }
   0x3   :  { %v382_v12 = vld [vmem:[%s543_s1 + $0x68] ss:$16 sps:$4 sm:$0xff]   ;;  %v383_v13 = vld [vmem:[%s543_s1 + $0x44] ss:$16 sps:$4 sm:$0xff]   ;;  %v385_v14 = vld [vmem:[%s543_s1 + $0x4c] ss:$16 sps:$4 sm:$0xff]  }
   0x4   :  { %366 = vmatprep.subr.msk.bf16.mxu0 %vm134_vm0, %v363_v3  ;;  %368 = vmatprep.subr.msk.bf16.mxu1 %vm134_vm0, %v365_v4  ;;  %v136_v9 = vsel %vm134_vm0, %v362_v5, 0  ;;  %v142_v10 = vsel %vm134_vm0, %v364_v6, 0  ;;  %v387_v15 = vld [vmem:[%s543_s1 + $0x40] ss:$16 sps:$4 sm:$0xff]   ;;  %v388_v16 = vld [vmem:[%s543_s1 + $0x48] ss:$16 sps:$4 sm:$0xff]  }
   0x5   :  { %154 = vmatpush1.bf16.msra.mxu0 %v136_v9  ;;  %195 = vmatpush1.bf16.msra.mxu1 %v142_v10  ;;  %v389_v17 = vld [vmem:[%s543_s1 + $0x24] ss:$16 sps:$4 sm:$0xff]   ;;  %v391_v18 = vld [vmem:[%s543_s1 + $0x2c] ss:$16 sps:$4 sm:$0xff]   ;;  %v393_v20 = vld [vmem:[%s543_s1 + $0x20] ss:$16 sps:$4 sm:$0xff]  }
   0x6   :  { %155 = vmatprep.subr.bf16.mxu0 %v377_v7  ;;  %196 = vmatprep.subr.bf16.mxu1 %v379_v8  ;;  %v34_v19 = vld [vmem:[%s544_s2] sm:$0xff]  ;;  %v394_v21 = vld [vmem:[%s543_s1 + $0x28] ss:$16 sps:$4 sm:$0xff]   ;;  %v397_v23 = vld [vmem:[%s543_s1 + $0xc] ss:$16 sps:$4 sm:$0xff]  }
   0x7   :  { %v395_v22 = vld [vmem:[%s543_s1 + $0x4] ss:$16 sps:$4 sm:$0xff]   ;;  %37 = vperm.xlu0 %372, %v34_v19   ;;  %v399_v24 = vld [vmem:[%s543_s1] ss:$16 sps:$4 sm:$0xff]   ;;  %v400_v25 = vld [vmem:[%s543_s1 + $0x8] ss:$16 sps:$4 sm:$0xff]  }
   0x8   :  { %v15_v26 = vld [vmem:[%s545_s0] sm:$0xf] }
   0x9   :  { %156 = vmatpush1.bf16.msra.mxu0 %v381_v11  ;;  %197 = vmatpush1.bf16.msra.mxu1 %v382_v12 }
   0xa   :  { %157 = vmatprep.subr.bf16.mxu0 %v383_v13  ;;  %198 = vmatprep.subr.bf16.mxu1 %v385_v14 }
   0xd   :  { %158 = vmatpush1.bf16.msra.mxu0 %v387_v15  ;;  %199 = vmatpush1.bf16.msra.mxu1 %v388_v16 }
   0xe   :  { %159 = vmatprep.subr.bf16.mxu0 %v389_v17  ;;  %200 = vmatprep.subr.bf16.mxu1 %v391_v18 }
  0x11   :  { %160 = vmatpush1.bf16.msra.mxu0 %v393_v20  ;;  %201 = vmatpush1.bf16.msra.mxu1 %v394_v21 }
  0x12   :  { %161 = vmatprep.subr.bf16.mxu0 %v395_v22  ;;  %202 = vmatprep.subr.bf16.mxu1 %v397_v23 }
  0x15   :  { %162 = vmatpush1.bf16.msra.mxu0 %v399_v24  ;;  %203 = vmatpush1.bf16.msra.mxu1 %v400_v25 }
  0x18   :  { %367 = vmatmul.mubr.msk.bf16.vlgmr.msra.gmra.mxu0 %vm130_vm1, %v15_v26  ;;  %369 = vmatmul.mubr.msk.bf16.vlgmr.msra.gmra.mxu1 %vm130_vm1, %v15_v26 }
  0x82   :  { %v38_v27 = vpop.permute.xlu0 %37 }
  0xd8   :  { %v181_v28 = vpop.f32.mrf.mxu0  ;;  %v222_v29 = vpop.f32.mrf.mxu1 }
  0xd9   :  { %v499_v30 = vadd.f32 %v181_v28, %v38_v27  ;;  %v501_v31 = vadd.f32 %v222_v29, %v38_v27 }
  0xda   :  { %v183_v32 = vpop.f32.mrf.mxu0  ;;  %v224_v33 = vpop.f32.mrf.mxu1 }
  0xdb   :  { %v504_v34 = vmul.f32 0.70710677, %v499_v30  ;;  %v507_v35 = vmul.f32 0.70710677, %v501_v31  ;;  %v509_v36 = vadd.f32 %v183_v32, %v38_v27  ;;  %v511_v37 = vadd.f32 %v224_v33, %v38_v27 }
  0xdc   :  { %v185_v38 = vpop.f32.mrf.mxu0  ;;  %v226_v39 = vpop.f32.mrf.mxu1 }
  0xdd   :  { %v245_v40 = vand.u32 2147483647, %v504_v34  ;;  %v247_v41 = vand.u32 2147483647, %v507_v35  ;;  %v516_v42 = vmul.f32 0.70710677, %v509_v36 }
  0xde   :  { %v186_v43 = vpop.f32.mrf.mxu0  ;;  %v227_v44 = vpop.f32.mrf.mxu1  ;;  %v520_v48 = vmul.f32 0.70710677, %v511_v37  ;;  %vm237_vm2 = vcmp.ge.f32.partialorder %v504_v34, 0.0  ;;  %vm239_vm3 = vcmp.ge.f32.partialorder %v507_v35, 0.0 }
  0xdf   :  { %v249_v45 = vmul.f32 0.3275911, %v245_v40  ;;  %v251_v46 = vmul.f32 0.3275911, %v247_v41  ;;  %v246_v47 = vand.u32 2147483647, %v516_v42 }
  0xe0   :  { %v248_v53 = vand.u32 2147483647, %v520_v48  ;;  %v301_v56 = vsub.f32 0.0, %v245_v40  ;;  %v303_v57 = vsub.f32 0.0, %v247_v41  ;;  %vm238_vm4 = vcmp.ge.f32.partialorder %v516_v42, 0.0 }
  0xe1   :  { %v253_v49 = vadd.f32 1.0, %v249_v45  ;;  %v255_v50 = vadd.f32 1.0, %v251_v46  ;;  %v250_v51 = vmul.f32 0.3275911, %v246_v47  ;;  %v302_v59 = vsub.f32 0.0, %v246_v47 }
  0xe2   :  { %v252_v54 = vmul.f32 0.3275911, %v248_v53  ;;  %v305_v58 = vmul.f32 %v301_v56, %v245_v40  ;;  %v307_v60 = vmul.f32 %v303_v57, %v247_v41  ;;  %v304_v62 = vsub.f32 0.0, %v248_v53 }
  0xe3   :  { %401 = vrcp.f32 %v253_v49  ;;  %v254_v52 = vadd.f32 1.0, %v250_v51  ;;  %v306_v2 = vmul.f32 %v302_v59, %v246_v47  ;;  %v418_v56 = vmov -1.0  }
  0xe4   :  { %403 = vrcp.f32 %v255_v50  ;;  %v256_v55 = vadd.f32 1.0, %v252_v54  ;;  %v309_v1 = vmul.f32 1.442695, %v305_v58  ;;  %v313_v4 = vmul.f32 1.442695, %v307_v60 }
  0xe5   :  { %405 = vrcp.f32 %v254_v52  ;;  %v308_v8 = vmul.f32 %v304_v62, %v248_v53  ;;  %v311_v11 = vmul.f32 1.442695, %v306_v2  ;;  %v241_v57 = vsel %vm237_vm2, 1.0, %v418_v56 }
  0xe6   :  { %407 = vrcp.f32 %v256_v55  ;;  %v231_v2 = vmul.f32 0.5, %v501_v31  ;;  %vm240_vm5 = vcmp.ge.f32.partialorder %v520_v48, 0.0  ;;  %v230_v42 = vmul.f32 0.5, %v509_v36 }
  0xe7   :  { %409 = vpow2.f32 %v309_v1  ;;  %v315_v18 = vmul.f32 1.442695, %v308_v8  ;;  %v229_v1 = vmul.f32 0.5, %v499_v30  ;;  %v232_v48 = vmul.f32 0.5, %v511_v37 }
  0xe8   :  { %411 = vpow2.f32 %v313_v4 }
  0xe9   :  { %413 = vpow2.f32 %v311_v11  ;;  %v244_v11 = vsel %vm240_vm5, 1.0, %v418_v56 }
  0xea   :  { %415 = vpow2.f32 %v315_v18 }
  0xf0   :  { %v402_v61 = vpop.eup %401 }
  0xf1   :  { %v404_v63 = vpop.eup %403  ;;  %v265_v0 = vmul.f32 1.0614054, %v402_v61 }
  0xf2   :  { %v267_v3 = vmul.f32 1.0614054, %v404_v63  ;;  %v406_v6 = vpop.eup %405 }
  0xf3   :  { %v269_v5 = vadd.f32 -1.4531521, %v265_v0  ;;  %v266_v10 = vmul.f32 1.0614054, %v406_v6  ;;  %v408_v13 = vpop.eup %407 }
  0xf4   :  { %v271_v7 = vadd.f32 -1.4531521, %v267_v3  ;;  %v268_v17 = vmul.f32 1.0614054, %v408_v13  ;;  %v410_v44 = vpop.eup %409 }
  0xf5   :  { %v273_v9 = vmul.f32 %v402_v61, %v269_v5  ;;  %v270_v15 = vadd.f32 -1.4531521, %v266_v10  ;;  %v412_v47 = vpop.eup %411  ;;  %v242_v5 = vsel %vm238_vm4, 1.0, %v418_v56 }
  0xf6   :  { %v275_v12 = vmul.f32 %v404_v63, %v271_v7  ;;  %v272_v22 = vadd.f32 -1.4531521, %v268_v17  ;;  %v414_v55 = vpop.eup %413 }
  0xf7   :  { %v277_v14 = vadd.f32 1.4214138, %v273_v9  ;;  %v274_v20 = vmul.f32 %v406_v6, %v270_v15  ;;  %v416_v0 = vpop.eup %415 }
  0xf8   :  { %v279_v16 = vadd.f32 1.4214138, %v275_v12  ;;  %v276_v26 = vmul.f32 %v408_v13, %v272_v22 }
  0xf9   :  { %v281_v19 = vmul.f32 %v402_v61, %v277_v14  ;;  %v278_v24 = vadd.f32 1.4214138, %v274_v20 }
  0xfa   :  { %v283_v21 = vmul.f32 %v404_v63, %v279_v16  ;;  %v280_v32 = vadd.f32 1.4214138, %v276_v26 }
  0xfb   :  { %v285_v23 = vadd.f32 -0.28449672, %v281_v19  ;;  %v282_v28 = vmul.f32 %v406_v6, %v278_v24 }
  0xfc   :  { %v287_v25 = vadd.f32 -0.28449672, %v283_v21  ;;  %v284_v40 = vmul.f32 %v408_v13, %v280_v32 }
  0xfd   :  { %v289_v27 = vmul.f32 %v402_v61, %v285_v23  ;;  %v286_v38 = vadd.f32 -0.28449672, %v282_v28 }
  0xfe   :  { %v291_v29 = vmul.f32 %v404_v63, %v287_v25  ;;  %v288_v46 = vadd.f32 -0.28449672, %v284_v40 }
  0xff   :  { %v293_v33 = vadd.f32 0.2548296, %v289_v27  ;;  %v290_v43 = vmul.f32 %v406_v6, %v286_v38 }
 0x100   :  { %v295_v39 = vadd.f32 0.2548296, %v291_v29  ;;  %v292_v52 = vmul.f32 %v408_v13, %v288_v46 }
 0x101   :  { %v297_v41 = vmul.f32 %v402_v61, %v293_v33  ;;  %v294_v50 = vadd.f32 0.2548296, %v290_v43  ;;  %v243_v61 = vsel %vm239_vm3, 1.0, %v418_v56 }
 0x102   :  { %v299_v45 = vmul.f32 %v404_v63, %v295_v39  ;;  %v296_v59 = vadd.f32 0.2548296, %v292_v52 }
 0x103   :  { %v317_v49 = vmul.f32 %v410_v44, %v297_v41  ;;  %v298_v54 = vmul.f32 %v406_v6, %v294_v50 }
 0x104   :  { %v319_v51 = vmul.f32 %v412_v47, %v299_v45  ;;  %v300_v34 = vmul.f32 %v408_v13, %v296_v59 }
 0x105   :  { %v321_v53 = vsub.f32 1.0, %v317_v49  ;;  %v318_v62 = vmul.f32 %v414_v55, %v298_v54 }
 0x106   :  { %v323_v58 = vsub.f32 1.0, %v319_v51  ;;  %v320_v6 = vmul.f32 %v416_v0, %v300_v34 }
 0x107   :  { %v325_v60 = vmul.f32 %v321_v53, %v241_v57  ;;  %v322_v3 = vsub.f32 1.0, %v318_v62 }
 0x108   :  { %v327_v63 = vmul.f32 %v323_v58, %v243_v61  ;;  %v324_v10 = vsub.f32 1.0, %v320_v6 }
 0x109   :  { %v329_v35 = vadd.f32 1.0, %v325_v60  ;;  %v326_v8 = vmul.f32 %v322_v3, %v242_v5 }
 0x10a   :  { %v331_v4 = vadd.f32 1.0, %v327_v63  ;;  %v328_v31 = vmul.f32 %v324_v10, %v244_v11 }
 0x10b   :  { %v333_v7 = vmul.f32 %v329_v35, %v229_v1  ;;  %v330_v30 = vadd.f32 1.0, %v326_v8 }
 0x10c   :  { %v335_v9 = vmul.f32 %v331_v4, %v231_v2  ;;  %v332_v13 = vadd.f32 1.0, %v328_v31 }
 0x10d   :  { %337 = vst [vmem:[%s546_s3] sm:$0xff] %v333_v7  ;;  %v334_v12 = vmul.f32 %v330_v30, %v230_v42 }
 0x10e   :  { %339 = vst [vmem:[%s546_s3 + $0x10] sm:$0xff] %v335_v9  ;;  %v336_v14 = vmul.f32 %v332_v13, %v232_v48 }
 0x10f   :  { %338 = vst [vmem:[%s546_s3 + $0x8] sm:$0xff] %v334_v12 }
 0x110   :  { %341 = vst.msk [vmem:[%s546_s3 + $0x18] sm:$0xff] %vm340_vm6, %v336_v14 }

// kernel: cnn_decoder_forward.11
= control target key start
LH: loop header
LB: loop body
LE: loop exit
PB: predicated region body
PF: predicated region fallthrough
CT: control target
= control target key end

     0   :  { %v211_v1 = vmov 0   ;;  %vm82_vm0 = vcmask 261120   ;;  %vm175_vm1 = vcmask 64512   ;;  %s291_s1 = inlined_call_operand.vmem [shape: bf16[32,392], index: 1, kind: input, shape index: {}]   ;;  %s292_s2 = inlined_call_operand.vmem [shape: f32[16,1], index: 2, kind: input, shape index: {}]   ;;  %s293_s0 = inlined_call_operand.vmem [shape: bf16[16,32], index: 0, kind: input, shape index: {}]   ;;  %s294_s3 = inlined_call_operand.vmem [shape: f32[16,392], index: 3, kind: output, shape index: {}]  }
   0x1   :  { %v198_v0 = vld [vmem:[%s291_s1 + $0x24] ss:$16 sps:$4 sm:$0xff]   ;;  %118 = vmatprep.mubr.bf16.mxu0 %v211_v1  ;;  %161 = vmatprep.mubr.bf16.mxu1 %v211_v1  ;;  %v200_v2 = vld [vmem:[%s291_s1 + $0x2c] ss:$16 sps:$4 sm:$0xff]   ;;  %v202_v3 = vld [vmem:[%s291_s1 + $0x20] ss:$16 sps:$4 sm:$0xff]  }
   0x2   :  { %197 = vset.pattern.permute.xlu0 %v211_v1  ;;  %98 = vmatprep.subr.bf16.mxu0 %v198_v0  ;;  %v203_v4 = vld [vmem:[%s291_s1 + $0x28] ss:$16 sps:$4 sm:$0xff]   ;;  %v204_v5 = vld [vmem:[%s291_s1 + $0x4] ss:$16 sps:$4 sm:$0xff]   ;;  %v206_v6 = vld [vmem:[%s291_s1 + $0xc] ss:$16 sps:$4 sm:$0xff]  }
   0x3   :  { %141 = vmatprep.subr.bf16.mxu1 %v200_v2  ;;  %99 = vmatpush1.bf16.msra.mxu0 %v202_v3  ;;  %v208_v7 = vld [vmem:[%s291_s1] ss:$16 sps:$4 sm:$0xff]   ;;  %v209_v8 = vld [vmem:[%s291_s1 + $0x8] ss:$16 sps:$4 sm:$0xff]  }
   0x4   :  { %142 = vmatpush1.bf16.msra.mxu1 %v203_v4  ;;  %100 = vmatprep.subr.bf16.mxu0 %v204_v5  ;;  %v25_v9 = vld [vmem:[%s292_s2] sm:$0xff]  ;;  %v26_v11 = vld [vmem:[%s292_s2 + $0x8] sm:$0xff] }
   0x5   :  { %143 = vmatprep.subr.bf16.mxu1 %v206_v6  ;;  %v210_v10 = vld [vmem:[%s293_s0] sm:$0xff]   ;;  %29 = vperm.xlu0 %197, %v25_v9  }
   0x7   :  { %101 = vmatpush1.bf16.msra.mxu0 %v208_v7 }
   0x8   :  { %144 = vmatpush1.bf16.msra.mxu1 %v209_v8 }
   0x9   :  { %34 = vperm.xlu0 %197, %v26_v11  }
   0xa   :  { %194 = vmatmul.mubr.msk.bf16.vlgmr.msra.gmra.mxu0 %vm82_vm0, %v210_v10 }
   0xb   :  { %195 = vmatmul.mubr.msk.bf16.vlgmr.msra.gmra.mxu1 %vm82_vm0, %v210_v10 }
  0x80   :  { %v30_v12 = vpop.permute.xlu0 %29 }
  0x84   :  { %v35_v19 = vpop.permute.xlu0 %34 }
  0xca   :  { %v120_v13 = vpop.f32.mrf.mxu0 }
  0xcb   :  { %v163_v14 = vpop.f32.mrf.mxu1  ;;  %v121_v15 = vadd.f32 %v120_v13, %v30_v12 }
  0xcc   :  { %v164_v16 = vadd.f32 %v163_v14, %v30_v12  ;;  %v122_v17 = vpop.f32.mrf.mxu0 }
  0xcd   :  { %v165_v18 = vpop.f32.mrf.mxu1  ;;  %172 = vst [vmem:[%s294_s3] sm:$0xff] %v121_v15  ;;  %v123_v20 = vadd.f32 %v122_v17, %v30_v12 }
  0xce   :  { %174 = vst [vmem:[%s294_s3 + $0x10] sm:$0xff] %v164_v16  ;;  %v166_v21 = vadd.f32 %v165_v18, %v30_v12  ;;  %v124_v22 = vpop.f32.mrf.mxu0 }
  0xcf   :  { %v167_v23 = vpop.f32.mrf.mxu1  ;;  %173 = vst [vmem:[%s294_s3 + $0x8] sm:$0xff] %v123_v20  ;;  %v125_v24 = vadd.f32 %v124_v22, %v35_v19 }
  0xd0   :  { %176 = vst.msk [vmem:[%s294_s3 + $0x18] sm:$0xff] %vm175_vm1, %v166_v21  ;;  %v168_v25 = vadd.f32 %v167_v23, %v35_v19  ;;  %v126_v26 = vpop.f32.mrf.mxu0 }
  0xd1   :  { %v169_v27 = vpop.f32.mrf.mxu1  ;;  %177 = vst [vmem:[%s294_s3 + $0x20] sm:$0xff] %v125_v24  ;;  %v127_v28 = vadd.f32 %v126_v26, %v35_v19 }
  0xd2   :  { %179 = vst [vmem:[%s294_s3 + $0x30] sm:$0xff] %v168_v25  ;;  %v170_v29 = vadd.f32 %v169_v27, %v35_v19 }
  0xd3   :  { %178 = vst [vmem:[%s294_s3 + $0x28] sm:$0xff] %v127_v28 }
  0xd4   :  { %180 = vst.msk [vmem:[%s294_s3 + $0x38] sm:$0xff] %vm175_vm1, %v170_v29 }

</bundles_post_ra>
